<compile_context>
chip_gen: v7x
topology: tpu7x:2x2x1
jax: 0.10.0
libtpu: 0.0.40
codegen_flags: <defaults>
</compile_context>

<pallas_src>
import functools
import math

import jax
import jax.numpy as jnp
from jax import lax
from jax.experimental import pallas as pl
from jax.experimental.pallas import tpu as pltpu


# ----------------------------------------------------------------------------
# Padding / tiling helpers (all static, host-side).
# ----------------------------------------------------------------------------

def _pad_channels(c, dtype):
    """Pad a channel count to the sublane tile, with room for the ones-row."""
    mult = max(8, 32 // jnp.dtype(dtype).itemsize)     # f32 -> 8, bf16 -> 16
    return ((c + 1 + mult - 1) // mult) * mult          # +1: denominator row


def _pick_tq(n, vmem_budget_bytes=8 << 20):
    """Query-tile width: bounds the (n_keys, tq) f32 score tile + its exp."""
    if n % 128 != 0:
        return n          # TODO(synk): ragged N -> monolithic fallback
    cap = max(128, (vmem_budget_bytes // (8 * n)) // 128 * 128)
    if n <= cap:
        return n
    for t in range(cap, 127, -128):
        if n % t == 0:
            return t
    return 128            # n is a multiple of 128, so this always divides


def _pad_lmsa_params(p, c_out, c_out_p, c_in_cols, dtype):
    """Pad one LMSA layer's weights to sublane-aligned shapes.

    Returns (wqkv_p, bqkv_p, wo_p, bo_p) with:
      * Q rows pre-scaled by 1/sqrt(c_out) (scale folded out of the kernel),
      * V-section row `c_out` = all-ones (bias 1, weight 0) so the PV matmul
        emits the softmax denominator as an extra output row,
      * all padding rows/columns exactly zero.
    """
    wqkv = jnp.asarray(p["wqkv"], dtype)    # (3*c_out, c_in)
    bqkv = jnp.asarray(p["bqkv"], dtype)    # (3*c_out, 1)
    wo = jnp.asarray(p["wo"], dtype)        # (c_out, c_out)
    bo = jnp.asarray(p["bo"], dtype)        # (c_out, 1)
    scale = jnp.asarray(1.0 / math.sqrt(c_out), dtype)

    wq, wk, wv = jnp.split(wqkv, 3, axis=0)
    bq, bk, bv = jnp.split(bqkv, 3, axis=0)

    def pad2(a, rows, cols):
        out = jnp.zeros((rows, cols), dtype)
        return out.at[:a.shape[0], :a.shape[1]].set(a)

    wq_p = pad2(wq * scale, c_out_p, c_in_cols)
    wk_p = pad2(wk, c_out_p, c_in_cols)
    wv_p = pad2(wv, c_out_p, c_in_cols)
    bq_p = pad2(bq * scale, c_out_p, 1)
    bk_p = pad2(bk, c_out_p, 1)
    bv_p = pad2(bv, c_out_p, 1).at[c_out, 0].set(1.0)   # ones row -> denominator
    wo_p = pad2(wo, c_out_p, c_out_p)                    # col c_out stays 0
    bo_p = pad2(bo, c_out_p, 1)

    wqkv_p = jnp.concatenate([wq_p, wk_p, wv_p], axis=0)  # (3*c_out_p, c_in_cols)
    bqkv_p = jnp.concatenate([bq_p, bk_p, bv_p], axis=0)  # (3*c_out_p, 1)
    return wqkv_p, bqkv_p, wo_p, bo_p


# ----------------------------------------------------------------------------
# Kernel.
# ----------------------------------------------------------------------------

def _lmsa_block(x, wqkv_ref, bqkv_ref, wo_ref, bo_ref, qkv_s,
                c_out, c_out_p, tq, emit):
    """One LMSA layer, channel-major, query-tiled.

    x: (c_in, N) value in the compute dtype.  Emits f32 (c_out_p, tq) tiles
    via `emit(start, tile)`; pad rows of every tile are exactly zero.
    """
    dt = x.dtype
    N = x.shape[-1]

    # Fused Q/K/V projection (one fat matmul), f32 accumulation.
    qkv = jnp.dot(wqkv_ref[...], x, preferred_element_type=jnp.float32)
    qkv = qkv + bqkv_ref[...].astype(jnp.float32)
    # Park qkv in an aligned scratch so q/k/v slices (and dynamic query tiles)
    # are plain ref views - c_out_p is a multiple of the sublane tile.
    qkv_s[0:3 * c_out_p, :] = qkv.astype(dt)

    k = qkv_s[1 * c_out_p:2 * c_out_p, :]    # (c_out_p, N)
    v = qkv_s[2 * c_out_p:3 * c_out_p, :]    # (c_out_p, N); row c_out == 1.0
    wo = wo_ref[...]
    bo = bo_ref[...].astype(jnp.float32)

    @pl.loop(0, N // tq)
    def _(t):
        start = pl.multiple_of(t * tq, tq)
        qt = qkv_s[0:c_out_p, pl.ds(start, tq)]                   # (c_out_p, tq)

        # Key-major scores: the (N, tq) matrix is only ever a matmul *output*
        # or a canonical RHS -> no (N, N) transpose is materialized.
        sT = lax.dot_general(k, qt, (((0,), (0,)), ((), ())),
                             preferred_element_type=jnp.float32)   # (N_keys, tq)
        m = jnp.max(sT, axis=0, keepdims=True)                     # (1, tq)
        z = sT - m
        if dt == jnp.bfloat16:
            p = jnp.exp(z.astype(jnp.bfloat16))        # bf16 EUP (~2x on v6e/v7x)
        else:
            p = jnp.exp(z).astype(dt)

        # PV matmul in canonical (M,K)x(K,N) form; the all-ones V row makes
        # row `c_out` of ctx the softmax denominator (key-sum done on the MXU).
        ctx = jnp.dot(v, p, preferred_element_type=jnp.float32)    # (c_out_p, tq)
        inv = pl.reciprocal(ctx[c_out:c_out + 1, :], approx=True)  # (1, tq)

        # Normalization commutes with the channel projection (per-query scale),
        # so project the unnormalized ctx and rescale the small result.
        proj = jnp.dot(wo, ctx.astype(dt),
                       preferred_element_type=jnp.float32)         # (c_out_p, tq)
        emit(start, proj * inv + bo)


def _bottleneck_kernel(add_residual, c_mid, c_mid_p, c2, c2_p, tq,
                       x_ref,
                       wqkv1_ref, bqkv1_ref, wo1_ref, bo1_ref,
                       wqkv2_ref, bqkv2_ref, wo2_ref, bo2_ref,
                       o_ref, qkv_s, y_s):
    """One batch element per grid step; cv1 -> cv2 -> (+x) entirely in VMEM."""
    x = x_ref[0]                                       # (C1, N), native dtype

    def emit_y(start, val):                            # val: (c_mid_p, tq) f32
        y_s[:, pl.ds(start, tq)] = val.astype(y_s.dtype)

    _lmsa_block(x, wqkv1_ref, bqkv1_ref, wo1_ref, bo1_ref,
                qkv_s, c_mid, c_mid_p, tq, emit_y)

    y = y_s[...]                                       # (c_mid_p, N), pad rows = 0

    def emit_o(start, val):                            # val: (c2_p, tq) f32
        out = val[:c2, :]
        if add_residual:
            out = out + x_ref[0, :, pl.ds(start, tq)].astype(jnp.float32)
        o_ref[0, :, pl.ds(start, tq)] = out.astype(o_ref.dtype)

    _lmsa_block(y, wqkv2_ref, bqkv2_ref, wo2_ref, bo2_ref,
                qkv_s, c2, c2_p, tq, emit_o)


# ----------------------------------------------------------------------------
# Wrapper.
# ----------------------------------------------------------------------------

def bottleneck_lmsa(x_nchw, params, shortcut=True, tq=None):
    """Forward pass of Bottleneck_LMSA.  x_nchw: (B, C1, H, W) -> (B, C2, H, W)."""
    B, C1, H, W = x_nchw.shape
    N = H * W
    dtype = x_nchw.dtype
    c_ = params["cv1"]["wo"].shape[0]
    C2 = params["cv2"]["wo"].shape[0]
    add = shortcut and (C1 == C2)

    c_p = _pad_channels(c_, dtype)
    c2_p = _pad_channels(C2, dtype)
    max_cp = max(c_p, c2_p)
    if tq is None:
        tq = _pick_tq(N)
    assert N % tq == 0, (N, tq)

    # Channel-major tokens: NCHW -> (B, C, N) is just a reshape (no transpose).
    x_cn = x_nchw.reshape(B, C1, N)

    # Tiny one-time weight prep: sublane padding, scale fold, ones-row for the
    # softmax denominator.  (Weights, not activations -> negligible.)
    w1 = _pad_lmsa_params(params["cv1"], c_, c_p, C1, dtype)
    w2 = _pad_lmsa_params(params["cv2"], C2, c2_p, c_p, dtype)
    weights = (*w1, *w2)

    def _const(arr):
        nd = arr.ndim
        return pl.BlockSpec(arr.shape, lambda b, _nd=nd: (0,) * _nd)

    in_specs = ([pl.BlockSpec((1, C1, N), lambda b: (b, 0, 0))]
                + [_const(w) for w in weights])

    itemsize = jnp.dtype(dtype).itemsize
    flops = 2 * B * N * (3 * c_p * C1 + 2 * c_p * N + c_p * c_p          # cv1
                         + 3 * c2_p * c_p + 2 * c2_p * N + c2_p * c2_p)  # cv2
    transcendentals = 2 * B * N * N + 2 * B * N                          # exp + recip
    bytes_accessed = itemsize * (x_cn.size + B * C2 * N) \
        + sum(int(w.size) * jnp.dtype(w.dtype).itemsize for w in weights)

    out = pl.pallas_call(
        functools.partial(_bottleneck_kernel, add, c_, c_p, C2, c2_p, tq),
        out_shape=jax.ShapeDtypeStruct((B, C2, N), dtype),
        grid=(B,),
        in_specs=in_specs,
        out_specs=pl.BlockSpec((1, C2, N), lambda b: (b, 0, 0)),
        scratch_shapes=[pltpu.VMEM((3 * max_cp, N), dtype),   # fused qkv (aligned views)
                        pltpu.VMEM((c_p, N), dtype)],         # cv1 output
        compiler_params=pltpu.CompilerParams(
            dimension_semantics=("parallel",)),
        cost_estimate=pl.CostEstimate(
            flops=int(flops),
            transcendentals=int(transcendentals),
            bytes_accessed=int(bytes_accessed)),
    )(x_cn, *weights)

    return out.reshape(B, C2, H, W)


# ----------------------------------------------------------------------------
# Pure-JAX reference (for correctness checking only).
# ----------------------------------------------------------------------------

def _lmsa_ref(x, p, c_out):
    qkv = jnp.einsum("oc,bcn->bon", p["wqkv"], x) + p["bqkv"][None]
    q, k, v = jnp.split(qkv, 3, axis=1)
    s = jnp.einsum("bci,bcj->bij", q, k) / math.sqrt(c_out)
    a = jax.nn.softmax(s, axis=-1)
    ctx = jnp.einsum("bcj,bij->bci", v, a)
    return jnp.einsum("oc,bcn->bon", p["wo"], ctx) + p["bo"][None]


def bottleneck_lmsa_ref(x_nchw, params, shortcut=True):
    B, C1, H, W = x_nchw.shape
    N = H * W
    c_ = params["cv1"]["wo"].shape[0]
    C2 = params["cv2"]["wo"].shape[0]
    x = x_nchw.reshape(B, C1, N)
    z = _lmsa_ref(_lmsa_ref(x, params["cv1"], c_), params["cv2"], C2)
    if shortcut and C1 == C2:
        z = z + x
    return z.reshape(B, C2, H, W)


# ----------------------------------------------------------------------------
# Parameter init (matches nn.Conv2d(k=1) defaults).
# ----------------------------------------------------------------------------

def init_lmsa_params(key, c_in, c_out, dtype=jnp.float32):
    kq, kk, kv, ko, kbq, kbk, kbv, kbo = jax.random.split(key, 8)
    bw_in = 1.0 / math.sqrt(c_in)
    bw_out = 1.0 / math.sqrt(c_out)

    def u(k, shape, bound):
        return jax.random.uniform(k, shape, dtype, -bound, bound)

    wq = u(kq, (c_out, c_in), bw_in)
    wk = u(kk, (c_out, c_in), bw_in)
    wv = u(kv, (c_out, c_in), bw_in)
    bq = u(kbq, (c_out, 1), bw_in)
    bk = u(kbk, (c_out, 1), bw_in)
    bv = u(kbv, (c_out, 1), bw_in)
    return {
        "wqkv": jnp.concatenate([wq, wk, wv], axis=0),   # (3*c_out, c_in)
        "bqkv": jnp.concatenate([bq, bk, bv], axis=0),   # (3*c_out, 1)
        "wo": u(ko, (c_out, c_out), bw_out),             # (c_out, c_out)
        "bo": u(kbo, (c_out, 1), bw_out),                # (c_out, 1)
    }


def init_bottleneck_params(key, c1, c2, e=0.5, dtype=jnp.float32):
    c_ = int(c2 * e)
    k1, k2 = jax.random.split(key)
    return {"cv1": init_lmsa_params(k1, c1, c_, dtype),
            "cv2": init_lmsa_params(k2, c_, c2, dtype)}


if __name__ == "__main__":
    key = jax.random.PRNGKey(0)
    k_x, k_p = jax.random.split(key)

    B, C, H, W = 2, 8, 16, 16          # c1 = c2 = 8, e = 0.5 -> c_ = 4, N = 256
    x = jax.random.normal(k_x, (B, C, H, W), jnp.float32)
    params = init_bottleneck_params(k_p, C, C, e=0.5)

    ref = bottleneck_lmsa_ref(x, params, shortcut=True)

    # Default (single query tile at this size).
    out = jax.block_until_ready(bottleneck_lmsa(x, params, shortcut=True))
    assert out.shape == (B, C, H, W), out.shape
    assert bool(jnp.all(jnp.isfinite(out)))
    assert bool(jnp.allclose(out, ref, rtol=1e-2, atol=1e-2)), \
        float(jnp.max(jnp.abs(out - ref)))

    # Force the query-tiled path (2 tiles) to exercise dynamic tile starts.
    out_t = jax.block_until_ready(bottleneck_lmsa(x, params, shortcut=True, tq=128))
    assert bool(jnp.allclose(out_t, ref, rtol=1e-2, atol=1e-2)), \
        float(jnp.max(jnp.abs(out_t - ref)))

    print("KERNEL_OK")
</pallas_src>

<mosaic_0001>
module attributes {stable_mosaic.version = 11 : i64} {
  func.func @_bottleneck_kernel(%arg0: i32, %arg1: memref<1x8x256xf32, #tpu.memory_space<vmem>>, %arg2: memref<24x8xf32, #tpu.memory_space<vmem>>, %arg3: memref<24x1xf32, #tpu.memory_space<vmem>>, %arg4: memref<8x8xf32, #tpu.memory_space<vmem>>, %arg5: memref<8x1xf32, #tpu.memory_space<vmem>>, %arg6: memref<48x8xf32, #tpu.memory_space<vmem>>, %arg7: memref<48x1xf32, #tpu.memory_space<vmem>>, %arg8: memref<16x16xf32, #tpu.memory_space<vmem>>, %arg9: memref<16x1xf32, #tpu.memory_space<vmem>>, %arg10: memref<1x8x256xf32, #tpu.memory_space<vmem>>, %arg11: memref<48x256xf32, #tpu.memory_space<vmem>>, %arg12: memref<8x256xf32, #tpu.memory_space<vmem>>) attributes {dimension_semantics = [#tpu.dimension_semantics<parallel>], iteration_bounds = array<i64: 2>, scalar_prefetch = 0 : i64, scratch_operands = 2 : i64, tpu.core_type = #tpu.core_type<tc>, window_params = [{transform_indices = @transform_0, window_bounds = array<i64: 1, 8, 256>}, {pipeline_mode = #tpu.pipeline_mode<synchronous>, transform_indices = @transform_1, window_bounds = array<i64: 24, 8>}, {pipeline_mode = #tpu.pipeline_mode<synchronous>, transform_indices = @transform_2, window_bounds = array<i64: 24, 1>}, {pipeline_mode = #tpu.pipeline_mode<synchronous>, transform_indices = @transform_3, window_bounds = array<i64: 8, 8>}, {pipeline_mode = #tpu.pipeline_mode<synchronous>, transform_indices = @transform_4, window_bounds = array<i64: 8, 1>}, {pipeline_mode = #tpu.pipeline_mode<synchronous>, transform_indices = @transform_5, window_bounds = array<i64: 48, 8>}, {pipeline_mode = #tpu.pipeline_mode<synchronous>, transform_indices = @transform_6, window_bounds = array<i64: 48, 1>}, {pipeline_mode = #tpu.pipeline_mode<synchronous>, transform_indices = @transform_7, window_bounds = array<i64: 16, 16>}, {pipeline_mode = #tpu.pipeline_mode<synchronous>, transform_indices = @transform_8, window_bounds = array<i64: 16, 1>}, {transform_indices = @transform_9, window_bounds = array<i64: 1, 8, 256>}]} {
    %c0 = arith.constant 0 : index
    %c0_0 = arith.constant 0 : index
    %c0_1 = arith.constant 0 : index
    %0 = vector.load %arg1[%c0, %c0_0, %c0_1] : memref<1x8x256xf32, #tpu.memory_space<vmem>>, vector<1x8x256xf32>
    %1 = vector.shape_cast %0 : vector<1x8x256xf32> to vector<8x256xf32>
    %c0_2 = arith.constant 0 : index
    %c0_3 = arith.constant 0 : index
    %2 = vector.load %arg2[%c0_2, %c0_3] : memref<24x8xf32, #tpu.memory_space<vmem>>, vector<24x8xf32>
    %cst = arith.constant dense<0.000000e+00> : vector<24x256xf32>
    %3 = tpu.matmul %2, %1, %cst {dimension_numbers = #tpu.dot_dimension_numbers<[1], [0], [0], [1], [0, 0, 1, 1], [], []>} : vector<24x8xf32>, vector<8x256xf32>, vector<24x256xf32> -> vector<24x256xf32>
    %c0_4 = arith.constant 0 : index
    %c0_5 = arith.constant 0 : index
    %4 = vector.load %arg3[%c0_4, %c0_5] : memref<24x1xf32, #tpu.memory_space<vmem>>, vector<24x1xf32>
    %5 = vector.broadcast %4 : vector<24x1xf32> to vector<24x256xf32>
    %6 = arith.addf %3, %5 : vector<24x256xf32>
    %c0_6 = arith.constant 0 : index
    %c0_7 = arith.constant 0 : index
    %7 = vector.load %arg11[%c0_6, %c0_7] : memref<48x256xf32, #tpu.memory_space<vmem>>, vector<24x256xf32>
    tpu.vector_store %arg11[%c0_6, %c0_7], %6 {strides = array<i32>} : memref<48x256xf32, #tpu.memory_space<vmem>>, vector<24x256xf32>,
    %c8 = arith.constant 8 : index
    %c0_8 = arith.constant 0 : index
    %8 = vector.load %arg11[%c8, %c0_8] : memref<48x256xf32, #tpu.memory_space<vmem>>, vector<8x256xf32>
    %c16 = arith.constant 16 : index
    %c0_9 = arith.constant 0 : index
    %9 = vector.load %arg11[%c16, %c0_9] : memref<48x256xf32, #tpu.memory_space<vmem>>, vector<8x256xf32>
    %c0_10 = arith.constant 0 : index
    %c0_11 = arith.constant 0 : index
    %10 = vector.load %arg4[%c0_10, %c0_11] : memref<8x8xf32, #tpu.memory_space<vmem>>, vector<8x8xf32>
    %c0_12 = arith.constant 0 : index
    %c0_13 = arith.constant 0 : index
    %11 = vector.load %arg5[%c0_12, %c0_13] : memref<8x1xf32, #tpu.memory_space<vmem>>, vector<8x1xf32>
    %c0_i32 = arith.constant 0 : i32
    %c1_i32 = arith.constant 1 : i32
    %12 = arith.muli %c0_i32, %c1_i32 : i32
    %c0_i32_14 = arith.constant 0 : i32
    %13 = arith.addi %c0_i32_14, %12 : i32
    %c256_i32 = arith.constant 256 : i32
    %14 = arith.muli %13, %c256_i32 : i32
    %15 = tpu.assume_multiple %14, 256 : i32
    %c0_15 = arith.constant 0 : index
    %16 = arith.index_cast %15 : i32 to index
    %17 = vector.load %arg11[%c0_15, %16] : memref<48x256xf32, #tpu.memory_space<vmem>>, vector<8x256xf32>
    %cst_16 = arith.constant dense<0.000000e+00> : vector<256x256xf32>
    %18 = tpu.matmul %8, %17, %cst_16 {dimension_numbers = #tpu.dot_dimension_numbers<[0], [0], [1], [1], [0, 1, 1, 1], [], []>} : vector<8x256xf32>, vector<8x256xf32>, vector<256x256xf32> -> vector<256x256xf32>
    %cst_17 = arith.constant dense<0xFF800000> : vector<256xf32>
    %19 = vector.multi_reduction <maximumf>, %18, %cst_17 [0] : vector<256x256xf32> to vector<256xf32>
    %20 = vector.shape_cast %19 : vector<256xf32> to vector<1x256xf32>
    %21 = vector.broadcast %20 : vector<1x256xf32> to vector<256x256xf32>
    %22 = arith.subf %18, %21 : vector<256x256xf32>
    %23 = math.exp %22 : vector<256x256xf32>
    %cst_18 = arith.constant dense<0.000000e+00> : vector<8x256xf32>
    %24 = tpu.matmul %9, %23, %cst_18 {dimension_numbers = #tpu.dot_dimension_numbers<[1], [0], [0], [1], [0, 0, 1, 1], [], []>} : vector<8x256xf32>, vector<256x256xf32>, vector<8x256xf32> -> vector<8x256xf32>
    %25 = vector.extract_strided_slice %24 {offsets = [4, 0], sizes = [1, 256], strides = [1, 1]} : vector<8x256xf32> to vector<1x256xf32>
    %26 = tpu.reciprocal %25 {approx = true} : vector<1x256xf32> -> vector<1x256xf32>
    %cst_19 = arith.constant dense<0.000000e+00> : vector<8x256xf32>
    %27 = tpu.matmul %10, %24, %cst_19 {dimension_numbers = #tpu.dot_dimension_numbers<[1], [0], [0], [1], [0, 0, 1, 1], [], []>} : vector<8x8xf32>, vector<8x256xf32>, vector<8x256xf32> -> vector<8x256xf32>
    %28 = vector.broadcast %26 : vector<1x256xf32> to vector<8x256xf32>
    %29 = arith.mulf %27, %28 : vector<8x256xf32>
    %30 = vector.broadcast %11 : vector<8x1xf32> to vector<8x256xf32>
    %31 = arith.addf %29, %30 : vector<8x256xf32>
    %c0_20 = arith.constant 0 : index
    %32 = arith.index_cast %15 : i32 to index
    %33 = vector.load %arg12[%c0_20, %32] : memref<8x256xf32, #tpu.memory_space<vmem>>, vector<8x256xf32>
    tpu.vector_store %arg12[%c0_20, %32], %31 {strides = array<i32>} : memref<8x256xf32, #tpu.memory_space<vmem>>, vector<8x256xf32>,
    %c1_i32_21 = arith.constant 1 : i32
    %c0_22 = arith.constant 0 : index
    %c0_23 = arith.constant 0 : index
    %34 = vector.load %arg12[%c0_22, %c0_23] : memref<8x256xf32, #tpu.memory_space<vmem>>, vector<8x256xf32>
    %c0_24 = arith.constant 0 : index
    %c0_25 = arith.constant 0 : index
    %35 = vector.load %arg6[%c0_24, %c0_25] : memref<48x8xf32, #tpu.memory_space<vmem>>, vector<48x8xf32>
    %cst_26 = arith.constant dense<0.000000e+00> : vector<48x256xf32>
    %36 = tpu.matmul %35, %34, %cst_26 {dimension_numbers = #tpu.dot_dimension_numbers<[1], [0], [0], [1], [0, 0, 1, 1], [], []>} : vector<48x8xf32>, vector<8x256xf32>, vector<48x256xf32> -> vector<48x256xf32>
    %c0_27 = arith.constant 0 : index
    %c0_28 = arith.constant 0 : index
    %37 = vector.load %arg7[%c0_27, %c0_28] : memref<48x1xf32, #tpu.memory_space<vmem>>, vector<48x1xf32>
    %38 = vector.broadcast %37 : vector<48x1xf32> to vector<48x256xf32>
    %39 = arith.addf %36, %38 : vector<48x256xf32>
    %c0_29 = arith.constant 0 : index
    %c0_30 = arith.constant 0 : index
    %40 = vector.load %arg11[%c0_29, %c0_30] : memref<48x256xf32, #tpu.memory_space<vmem>>, vector<48x256xf32>
    tpu.vector_store %arg11[%c0_29, %c0_30], %39 {strides = array<i32>} : memref<48x256xf32, #tpu.memory_space<vmem>>, vector<48x256xf32>,
    %c16_31 = arith.constant 16 : index
    %c0_32 = arith.constant 0 : index
    %41 = vector.load %arg11[%c16_31, %c0_32] : memref<48x256xf32, #tpu.memory_space<vmem>>, vector<16x256xf32>
    %c32 = arith.constant 32 : index
    %c0_33 = arith.constant 0 : index
    %42 = vector.load %arg11[%c32, %c0_33] : memref<48x256xf32, #tpu.memory_space<vmem>>, vector<16x256xf32>
    %c0_34 = arith.constant 0 : index
    %c0_35 = arith.constant 0 : index
    %43 = vector.load %arg8[%c0_34, %c0_35] : memref<16x16xf32, #tpu.memory_space<vmem>>, vector<16x16xf32>
    %c0_36 = arith.constant 0 : index
    %c0_37 = arith.constant 0 : index
    %44 = vector.load %arg9[%c0_36, %c0_37] : memref<16x1xf32, #tpu.memory_space<vmem>>, vector<16x1xf32>
    %c0_i32_38 = arith.constant 0 : i32
    %c1_i32_39 = arith.constant 1 : i32
    %45 = arith.muli %c0_i32_38, %c1_i32_39 : i32
    %c0_i32_40 = arith.constant 0 : i32
    %46 = arith.addi %c0_i32_40, %45 : i32
    %c256_i32_41 = arith.constant 256 : i32
    %47 = arith.muli %46, %c256_i32_41 : i32
    %48 = tpu.assume_multiple %47, 256 : i32
    %c0_42 = arith.constant 0 : index
    %49 = arith.index_cast %48 : i32 to index
    %50 = vector.load %arg11[%c0_42, %49] : memref<48x256xf32, #tpu.memory_space<vmem>>, vector<16x256xf32>
    %cst_43 = arith.constant dense<0.000000e+00> : vector<256x256xf32>
    %51 = tpu.matmul %41, %50, %cst_43 {dimension_numbers = #tpu.dot_dimension_numbers<[0], [0], [1], [1], [0, 1, 1, 1], [], []>} : vector<16x256xf32>, vector<16x256xf32>, vector<256x256xf32> -> vector<256x256xf32>
    %cst_44 = arith.constant dense<0xFF800000> : vector<256xf32>
    %52 = vector.multi_reduction <maximumf>, %51, %cst_44 [0] : vector<256x256xf32> to vector<256xf32>
    %53 = vector.shape_cast %52 : vector<256xf32> to vector<1x256xf32>
    %54 = vector.broadcast %53 : vector<1x256xf32> to vector<256x256xf32>
    %55 = arith.subf %51, %54 : vector<256x256xf32>
    %56 = math.exp %55 : vector<256x256xf32>
    %cst_45 = arith.constant dense<0.000000e+00> : vector<16x256xf32>
    %57 = tpu.matmul %42, %56, %cst_45 {dimension_numbers = #tpu.dot_dimension_numbers<[1], [0], [0], [1], [0, 0, 1, 1], [], []>} : vector<16x256xf32>, vector<256x256xf32>, vector<16x256xf32> -> vector<16x256xf32>
    %58 = vector.extract_strided_slice %57 {offsets = [8, 0], sizes = [1, 256], strides = [1, 1]} : vector<16x256xf32> to vector<1x256xf32>
    %59 = tpu.reciprocal %58 {approx = true} : vector<1x256xf32> -> vector<1x256xf32>
    %cst_46 = arith.constant dense<0.000000e+00> : vector<16x256xf32>
    %60 = tpu.matmul %43, %57, %cst_46 {dimension_numbers = #tpu.dot_dimension_numbers<[1], [0], [0], [1], [0, 0, 1, 1], [], []>} : vector<16x16xf32>, vector<16x256xf32>, vector<16x256xf32> -> vector<16x256xf32>
    %61 = vector.broadcast %59 : vector<1x256xf32> to vector<16x256xf32>
    %62 = arith.mulf %60, %61 : vector<16x256xf32>
    %63 = vector.broadcast %44 : vector<16x1xf32> to vector<16x256xf32>
    %64 = arith.addf %62, %63 : vector<16x256xf32>
    %65 = vector.extract_strided_slice %64 {offsets = [0, 0], sizes = [8, 256], strides = [1, 1]} : vector<16x256xf32> to vector<8x256xf32>
    %c0_47 = arith.constant 0 : index
    %c0_48 = arith.constant 0 : index
    %66 = arith.index_cast %48 : i32 to index
    %67 = vector.load %arg1[%c0_47, %c0_48, %66] : memref<1x8x256xf32, #tpu.memory_space<vmem>>, vector<1x8x256xf32>
    %68 = vector.shape_cast %67 : vector<1x8x256xf32> to vector<8x256xf32>
    %69 = arith.addf %65, %68 : vector<8x256xf32>
    %c0_49 = arith.constant 0 : index
    %c0_50 = arith.constant 0 : index
    %70 = arith.index_cast %48 : i32 to index
    %71 = vector.load %arg10[%c0_49, %c0_50, %70] : memref<1x8x256xf32, #tpu.memory_space<vmem>>, vector<1x8x256xf32>
    %72 = vector.shape_cast %71 : vector<1x8x256xf32> to vector<8x256xf32>
    %73 = vector.shape_cast %69 : vector<8x256xf32> to vector<1x8x256xf32>
    tpu.vector_store %arg10[%c0_49, %c0_50, %70], %73 {strides = array<i32>} : memref<1x8x256xf32, #tpu.memory_space<vmem>>, vector<1x8x256xf32>,
    %c1_i32_51 = arith.constant 1 : i32
    return
  }
  func.func @transform_0(%arg0: i32) -> (i32, i32, i32) {
    %c0_i32 = arith.constant 0 : i32
    %c0_i32_0 = arith.constant 0 : i32
    %c0_i32_1 = arith.constant 0 : i32
    return %arg0, %c0_i32, %c0_i32_0 : i32, i32, i32
  }
  func.func @transform_1(%arg0: i32) -> (i32, i32) {
    %c0_i32 = arith.constant 0 : i32
    %c0_i32_0 = arith.constant 0 : i32
    %c0_i32_1 = arith.constant 0 : i32
    return %c0_i32, %c0_i32_0 : i32, i32
  }
  func.func @transform_2(%arg0: i32) -> (i32, i32) {
    %c0_i32 = arith.constant 0 : i32
    %c0_i32_0 = arith.constant 0 : i32
    %c0_i32_1 = arith.constant 0 : i32
    return %c0_i32, %c0_i32_0 : i32, i32
  }
  func.func @transform_3(%arg0: i32) -> (i32, i32) {
    %c0_i32 = arith.constant 0 : i32
    %c0_i32_0 = arith.constant 0 : i32
    %c0_i32_1 = arith.constant 0 : i32
    return %c0_i32, %c0_i32_0 : i32, i32
  }
  func.func @transform_4(%arg0: i32) -> (i32, i32) {
    %c0_i32 = arith.constant 0 : i32
    %c0_i32_0 = arith.constant 0 : i32
    %c0_i32_1 = arith.constant 0 : i32
    return %c0_i32, %c0_i32_0 : i32, i32
  }
  func.func @transform_5(%arg0: i32) -> (i32, i32) {
    %c0_i32 = arith.constant 0 : i32
    %c0_i32_0 = arith.constant 0 : i32
    %c0_i32_1 = arith.constant 0 : i32
    return %c0_i32, %c0_i32_0 : i32, i32
  }
  func.func @transform_6(%arg0: i32) -> (i32, i32) {
    %c0_i32 = arith.constant 0 : i32
    %c0_i32_0 = arith.constant 0 : i32
    %c0_i32_1 = arith.constant 0 : i32
    return %c0_i32, %c0_i32_0 : i32, i32
  }
  func.func @transform_7(%arg0: i32) -> (i32, i32) {
    %c0_i32 = arith.constant 0 : i32
    %c0_i32_0 = arith.constant 0 : i32
    %c0_i32_1 = arith.constant 0 : i32
    return %c0_i32, %c0_i32_0 : i32, i32
  }
  func.func @transform_8(%arg0: i32) -> (i32, i32) {
    %c0_i32 = arith.constant 0 : i32
    %c0_i32_0 = arith.constant 0 : i32
    %c0_i32_1 = arith.constant 0 : i32
    return %c0_i32, %c0_i32_0 : i32, i32
  }
  func.func @transform_9(%arg0: i32) -> (i32, i32, i32) {
    %c0_i32 = arith.constant 0 : i32
    %c0_i32_0 = arith.constant 0 : i32
    %c0_i32_1 = arith.constant 0 : i32
    return %arg0, %c0_i32, %c0_i32_0 : i32, i32, i32
  }
}

</mosaic_0001>

<bundles_post_ra>
// kernel: tpu_custom_call.1
= control target key start
LH: loop header
LB: loop body
LE: loop exit
PB: predicated region body
PF: predicated region fallthrough
CT: control target
= control target key end

     0   :  { %14 = vsyncpa [#allocation5], 0  ;;  %s4485_s0 = inlined_call_operand.vmem [shape: f32[2,8,256], index: 0, kind: input, shape index: {}]   ;;  %s4486_s1 = inlined_call_operand.vmem [shape: f32[24,8], index: 1, kind: input, shape index: {}]   ;;  %s4487_s2 = inlined_call_operand.vmem [shape: f32[24,1], index: 2, kind: input, shape index: {}]   ;;  %s4488_s3 = inlined_call_operand.vmem [shape: f32[8,8], index: 3, kind: input, shape index: {}]   ;;  %s4489_s4 = inlined_call_operand.vmem [shape: f32[8,1], index: 4, kind: input, shape index: {}]   ;;  %s4490_s5 = inlined_call_operand.vmem [shape: f32[48,8], index: 5, kind: input, shape index: {}]   ;;  %s4491_s6 = inlined_call_operand.vmem [shape: f32[48,1], index: 6, kind: input, shape index: {}]   ;;  %s4492_s7 = inlined_call_operand.vmem [shape: f32[16,16], index: 7, kind: input, shape index: {}]   ;;  %s4493_s8 = inlined_call_operand.vmem [shape: f32[16,1], index: 8, kind: input, shape index: {}]   ;;  %s4494_s9 = inlined_call_operand.hbm [shape: f32[2,8,256], index: 9, kind: output, shape index: {}]  }
   0x1   :  { %16 = vsyncpa [#allocation5 + $0x1], 0  ;;  %s3093_s30 = smov 0   ;;  %s3095_s10 = smov 0  }
   0x2   :  { %s3097_s11 = smov 0   ;;  %s3099_s12 = smov 0  }
   0x3 LB: > { %s3114_s13 = sadd.s32 4294967295, %s3038_s12   ;;  %s2441_s14 = sadd.s32 4294967294, %s3038_s12   ;;  %s3038_s12 = sphi %s3099_s12, %s4845_s12   ;;  %s3034_s11 = sphi %s3097_s11, %s4844_s11   ;;  %s3030_s10 = sphi %s3095_s10, %s4843_s10   ;;  %s3026_s30 = sphi %s3093_s30, %s4842_s30  }
   0x4   : > { %s3118_s15 = sadd.s32 1, %s3038_s12   ;;  %s223_s16 = sadd.s32 1, %s3034_s11 }
   0x5   : > { %s220_s17 = ssub.s32 %s3038_s12, %s3118_s15  ;;  %p233_p0 = scmp.ne.s32.totalorder %s3034_s11, %s3030_s10 }
   0x6   : > { %p221_p1 = scmp.eq.s32.totalorder %s220_s17, 0  ;;  %p234_p2 = scmp.eq.s32.totalorder %s3114_s13, 1 }
   0x7   : > { %p239_p3 = scmp.ne.s32.totalorder %s3030_s10, %s3026_s30  ;;  %p240_p4 = scmp.eq.s32.totalorder %s2441_s14, 1 }
   0x8   : > { %s3129_s18 = scalar_select %p221_p1, %s3034_s11, %s223_s16  }
   0x9   : > { %p3131_p5 = por %p234_p2, %p233_p0  ;;  %p3135_p6 = por %p240_p4, %p239_p3 }
   0xa   : > { %p2444_p7 = scmp.ge.s32.totalorder %s3038_s12, 1  ;;  %p290_p8 = scmp.lt.s32.totalorder %s3038_s12, 3 }
   0xc   : > { %p291_p9 = pnand %p2444_p7, %p290_p8 }
   0xe   : > { %294 = sbr.rel (%p291_p9) target bundleno = 2506 (0x9ca), region = 56 }
  0x15   : > { %p326_p10 = scmp.lt.s32.totalorder %s3114_s13, 1  ;;  %v4496_v0 = vmov 0.0   ;;  %v337_v1 = vld [vmem:[%s4487_s2 + $0x8] sm:$0xff]  ;;  %v4495_v2 = vmov 0   ;;  %v336_v3 = vld [vmem:[%s4487_s2] sm:$0xff]  ;;  %vm354_vm0 = vcmask 64512  }
  0x16   : > { %428 = vmatprep.mubr.f32.mxu0 %v4496_v0  ;;  %685 = vmatprep.mubr.f32.mxu1 %v4496_v0  ;;  %v333_v6 = vld [vmem:[%s4486_s1] sm:$0xff]  ;;  %v338_v7 = vld [vmem:[%s4487_s2 + $0x10] sm:$0xff]  ;;  %v334_v8 = vld [vmem:[%s4486_s1 + $0x8] sm:$0xff]  ;;  %vm1564_vm1 = vcmask 130048   ;;  %s323_s27 = sand.u32 1, %s3030_s10   ;;  %s2530_s14 = sshll.u32 %s3114_s13, 8 }
  0x17   : > { %s327_s23 = scalar_select %p326_p10, %s3114_s13, 1  ;;  %2710 = vset.pattern.permute.xlu0 %v4495_v2  ;;  %v458_v9 = vld [vmem:[%s4489_s4] sm:$0xff]  ;;  %v335_v10 = vld [vmem:[%s4486_s1 + $0x10] sm:$0xff]  ;;  %v1321_v12 = vld [vmem:[%s4491_s6 + $0x18] sm:$0xff] }
  0x18   : > { %346 = vperm.xlu0 %2710, %v337_v1   ;;  %v1320_v11 = vld [vmem:[%s4491_s6 + $0x10] sm:$0xff]  ;;  %v1318_v13 = vld [vmem:[%s4491_s6] sm:$0xff]  ;;  %v1319_v14 = vld [vmem:[%s4491_s6 + $0x8] sm:$0xff]  ;;  %s2445_s28 = sshll.u32 %s323_s27, 4  ;;  %s2368_s13 = scalar_lea.sflag [#allocation5], %s323_s27 }
  0x19   : > { %s2529_s24 = sshll.u32 %s327_s23, 4  ;;  %s325_s16 = scalar_lea.vmem [#allocation4], %s2445_s28 }
  0x1a   : > { %s3155_s29 = scalar_lea.vmem %s4485_s0, %s2529_s24  ;;  %s2382_s17 = sshll.u32 %s325_s16, 4  ;;  %s4445_s17 = int_to_ptr.vmem [resolvable:$true] %s2382_s17 }
  0x1b   : > { %v332_v4 = vld [vmem:[%s3155_s29 + $0x8] sm:$0xff]  ;;  %v331_v5 = vld [vmem:[%s3155_s29] sm:$0xff]  ;;  %s4443_s23 = scalar_lea.hbm %s4494_s9, %s2530_s14  ;;  %s3042_s24 = smov [#allocation4]  }
  0x1c   : > { %364 = vmatprep.subr.mxu0 %v332_v4  ;;  %341 = vperm.xlu0 %2710, %v336_v3   ;;  %s2980_s25 = sshll.u32 %s3042_s24, 4  ;;  %s2981_s25 = int_to_ptr.vmem [resolvable:$false] %s2980_s25 }
  0x1d   : > { %365 = vmatpush1.msra.mxu0 %v331_v5  ;;  %s2982_s26 = scalar_lea.vmem %s2981_s25, 512  ;;  %p2983_p0 = scmp.lt.s32.totalorder %s4445_s17, %s2981_s25 }
  0x1e   : > { %2448 = vmatmul.mubr.msk.f32.vlgmr.msra.gmra.mrb[0].mxu0 %vm354_vm0, %v333_v6 }
  0x1f   : > { %434 = vmatprep.mubr.f32.mxu0 %v4496_v0 }
  0x20   : > { %351 = vperm.xlu0 %2710, %v338_v7  }
  0x22   : > { %2449 = vmatmul.mubr.msk.f32.gmra.mrb[2].mxu0 %vm354_vm0, %v334_v8 }
  0x23   : > { %440 = vmatprep.mubr.f32.mxu0 %v4496_v0 }
  0x24   : > { %1303 = vperm.xlu0 %2710, %v458_v9  }
  0x26   : > { %2450 = vmatmul.mubr.msk.f32.gmra.mrb[4].mxu0 %vm354_vm0, %v335_v10 }
  0x27   : > { %1284 = vmatprep.mubr.f32.mxu0 %v4496_v0 }
  0x28   : > { %1336 = vperm.xlu0 %2710, %v1320_v11  }
  0x2c   : > { %1341 = vperm.xlu0 %2710, %v1321_v12  }
  0x30   : > { %1326 = vperm.xlu0 %2710, %v1318_v13  }
  0x34   : > { %1331 = vperm.xlu0 %2710, %v1319_v14  }
  0x97   : > { %v347_v15 = vpop.permute.xlu0 %346 }
  0x9b   : > { %v342_v17 = vpop.permute.xlu0 %341 }
  0x9f   : > { %v3258_v58 = vpop.permute.xlu0 %351 }
  0xa0   : > { %4600 = vst [vmem:[#allocation8_spill] sm:$0xff] %v3258_v58 }
  0xf1   : > { %v430_v16 = vpop.f32.mrb[0].mxu0 }
  0xf2   : > { %v432_v18 = vpop.f32.mrb[1].mxu0  ;;  %v431_v20 = vadd.f32 %v430_v16, %v342_v17 }
  0xf3   : > { %v433_v19 = vadd.f32 %v432_v18, %v342_v17 }
  0xf5   : > { %v436_v21 = vpop.f32.mrb[2].mxu0  ;;  %621 = vmatprep.subr.mxu1 %v433_v19 }
  0xf6   : > { %v438_v22 = vpop.f32.mrb[3].mxu0  ;;  %622 = vmatpush1.msra.mxu1 %v431_v20  ;;  %v437_v23 = vadd.f32 %v436_v21, %v347_v15 }
  0xf7   : > { %v439_v26 = vadd.f32 %v438_v22, %v347_v15 }
  0xf8   : > { %461 = vxpose.xlu1.b32.start.end [1/1] (short) %v437_v23, 128 }
  0xf9   : > { %v3192_v24 = vpop.f32.mrb[4].mxu0 }
  0xfa   : > { %4599 = vst [vmem:[#allocation7_spill] sm:$0xff] %v3192_v24  ;;  %v3194_v25 = vpop.f32.mrb[5].mxu0 }
  0xfb   : > { %v445_v59 = vadd.f32 %v3194_v25, %v3258_v58 }
 0x135   : > { %493 = vxpose.xlu1.b32.start.end [1/1] (short) %v439_v26, 128 }
 0x178   : > { %v477_v27 = vpop.trf.xlu1 }
 0x179   : > { %2451 = vmatmul.mubr.msk.f32.vlgmr.msra.gmra.mrb[0].mxu1 %vm354_vm0, %v477_v27 }
 0x17a   : > { %691 = vmatprep.mubr.f32.mxu1 %v4496_v0 }
 0x17c   : > { %v478_v28 = vpop.trf.xlu1 }
 0x17d   : > { %2452 = vmatmul.mubr.msk.f32.gmra.mrb[2].mxu1 %vm354_vm0, %v478_v28 }
 0x17e   : > { %697 = vmatprep.mubr.f32.mxu1 %v4496_v0 }
 0x180   : > { %v479_v29 = vpop.trf.xlu1 }
 0x181   : > { %2453 = vmatmul.mubr.msk.f32.gmra.mrb[4].mxu1 %vm354_vm0, %v479_v29 }
 0x182   : > { %703 = vmatprep.mubr.f32.mxu1 %v4496_v0 }
 0x184   : > { %v480_v30 = vpop.trf.xlu1 }
 0x185   : > { %2454 = vmatmul.mubr.msk.f32.gmra.mrb[6].mxu1 %vm354_vm0, %v480_v30 }
 0x186   : > { %709 = vmatprep.mubr.f32.mxu1 %v4496_v0 }
 0x188   : > { %v481_v31 = vpop.trf.xlu1 }
 0x189   : > { %2455 = vmatmul.mubr.msk.f32.gmra.mrb[8].mxu1 %vm354_vm0, %v481_v31 }
 0x18a   : > { %715 = vmatprep.mubr.f32.mxu1 %v4496_v0 }
 0x18c   : > { %v482_v32 = vpop.trf.xlu1 }
 0x18d   : > { %2456 = vmatmul.mubr.msk.f32.gmra.mrb[10].mxu1 %vm354_vm0, %v482_v32 }
 0x18e   : > { %721 = vmatprep.mubr.f32.mxu1 %v4496_v0 }
 0x190   : > { %v483_v33 = vpop.trf.xlu1 }
 0x191   : > { %2457 = vmatmul.mubr.msk.f32.gmra.mrb[12].mxu1 %vm354_vm0, %v483_v33 }
 0x192   : > { %727 = vmatprep.mubr.f32.mxu1 %v4496_v0 }
 0x194   : > { %v484_v34 = vpop.trf.xlu1 }
 0x195   : > { %2458 = vmatmul.mubr.msk.f32.gmra.mrb[14].mxu1 %vm354_vm0, %v484_v34 }
 0x196   : > { %733 = vmatprep.mubr.f32.mxu1 %v4496_v0 }
 0x198   : > { %v485_v35 = vpop.trf.xlu1 }
 0x199   : > { %2459 = vmatmul.mubr.msk.f32.gmra.mrb[16].mxu1 %vm354_vm0, %v485_v35 }
 0x19a   : > { %739 = vmatprep.mubr.f32.mxu1 %v4496_v0 }
 0x19c   : > { %v486_v36 = vpop.trf.xlu1 }
 0x19d   : > { %2460 = vmatmul.mubr.msk.f32.gmra.mrb[18].mxu1 %vm354_vm0, %v486_v36 }
 0x19e   : > { %745 = vmatprep.mubr.f32.mxu1 %v4496_v0 }
 0x1a0   : > { %v487_v37 = vpop.trf.xlu1 }
 0x1a1   : > { %2461 = vmatmul.mubr.msk.f32.gmra.mrb[20].mxu1 %vm354_vm0, %v487_v37 }
 0x1a2   : > { %751 = vmatprep.mubr.f32.mxu1 %v4496_v0 }
 0x1a4   : > { %v488_v38 = vpop.trf.xlu1 }
 0x1a5   : > { %2462 = vmatmul.mubr.msk.f32.gmra.mrb[22].mxu1 %vm354_vm0, %v488_v38 }
 0x1a6   : > { %757 = vmatprep.mubr.f32.mxu1 %v4496_v0 }
 0x1a8   : > { %v489_v39 = vpop.trf.xlu1 }
 0x1a9   : > { %2463 = vmatmul.mubr.msk.f32.gmra.mrb[24].mxu1 %vm354_vm0, %v489_v39 }
 0x1aa   : > { %763 = vmatprep.mubr.f32.mxu1 %v4496_v0 }
 0x1ac   : > { %v490_v40 = vpop.trf.xlu1 }
 0x1ad   : > { %2464 = vmatmul.mubr.msk.f32.gmra.mrb[26].mxu1 %vm354_vm0, %v490_v40 }
 0x1ae   : > { %769 = vmatprep.mubr.f32.mxu1 %v4496_v0 }
 0x1b0   : > { %v491_v41 = vpop.trf.xlu1 }
 0x1b1   : > { %2465 = vmatmul.mubr.msk.f32.gmra.mrb[28].mxu1 %vm354_vm0, %v491_v41 }
 0x1b2   : > { %775 = vmatprep.mubr.f32.mxu1 %v4496_v0 }
 0x1b4   : > { %v492_v42 = vpop.trf.xlu1 }
 0x1b5   : > { %2466 = vmatmul.mubr.msk.f32.gmra.mrb[30].mxu1 %vm354_vm0, %v492_v42 }
 0x1b6   : > { %781 = vmatprep.mubr.f32.mxu1 %v4496_v0 }
 0x1b8   : > { %v509_v43 = vpop.trf.xlu1 }
 0x1b9   : > { %2467 = vmatmul.mubr.msk.f32.gmra.mrb[32].mxu1 %vm354_vm0, %v509_v43 }
 0x1ba   : > { %787 = vmatprep.mubr.f32.mxu1 %v4496_v0 }
 0x1bc   : > { %v510_v44 = vpop.trf.xlu1 }
 0x1bd   : > { %2468 = vmatmul.mubr.msk.f32.gmra.mrb[34].mxu1 %vm354_vm0, %v510_v44 }
 0x1be   : > { %793 = vmatprep.mubr.f32.mxu1 %v4496_v0 }
 0x1c0   : > { %v511_v45 = vpop.trf.xlu1 }
 0x1c1   : > { %2469 = vmatmul.mubr.msk.f32.gmra.mrb[36].mxu1 %vm354_vm0, %v511_v45 }
 0x1c2   : > { %799 = vmatprep.mubr.f32.mxu1 %v4496_v0 }
 0x1c4   : > { %v512_v46 = vpop.trf.xlu1 }
 0x1c5   : > { %2470 = vmatmul.mubr.msk.f32.gmra.mrb[38].mxu1 %vm354_vm0, %v512_v46 }
 0x1c6   : > { %805 = vmatprep.mubr.f32.mxu1 %v4496_v0 }
 0x1c8   : > { %v513_v47 = vpop.trf.xlu1 }
 0x1c9   : > { %2471 = vmatmul.mubr.msk.f32.gmra.mrb[40].mxu1 %vm354_vm0, %v513_v47 }
 0x1ca   : > { %811 = vmatprep.mubr.f32.mxu1 %v4496_v0 }
 0x1cc   : > { %v514_v48 = vpop.trf.xlu1 }
 0x1cd   : > { %2472 = vmatmul.mubr.msk.f32.gmra.mrb[42].mxu1 %vm354_vm0, %v514_v48 }
 0x1ce   : > { %817 = vmatprep.mubr.f32.mxu1 %v4496_v0 }
 0x1d0   : > { %v515_v49 = vpop.trf.xlu1 }
 0x1d1   : > { %2473 = vmatmul.mubr.msk.f32.gmra.mrb[44].mxu1 %vm354_vm0, %v515_v49 }
 0x1d2   : > { %823 = vmatprep.mubr.f32.mxu1 %v4496_v0 }
 0x1d4   : > { %v516_v50 = vpop.trf.xlu1 }
 0x1d5   : > { %2474 = vmatmul.mubr.msk.f32.gmra.mrb[46].mxu1 %vm354_vm0, %v516_v50 }
 0x1d6   : > { %829 = vmatprep.mubr.f32.mxu1 %v4496_v0 }
 0x1d8   : > { %v517_v51 = vpop.trf.xlu1 }
 0x1d9   : > { %2475 = vmatmul.mubr.msk.f32.gmra.mrb[48].mxu1 %vm354_vm0, %v517_v51 }
 0x1da   : > { %835 = vmatprep.mubr.f32.mxu1 %v4496_v0 }
 0x1dc   : > { %v518_v52 = vpop.trf.xlu1 }
 0x1dd   : > { %2476 = vmatmul.mubr.msk.f32.gmra.mrb[50].mxu1 %vm354_vm0, %v518_v52 }
 0x1de   : > { %841 = vmatprep.mubr.f32.mxu1 %v4496_v0 }
 0x1e0   : > { %v519_v53 = vpop.trf.xlu1 }
 0x1e1   : > { %2477 = vmatmul.mubr.msk.f32.gmra.mrb[52].mxu1 %vm354_vm0, %v519_v53 }
 0x1e2   : > { %847 = vmatprep.mubr.f32.mxu1 %v4496_v0 }
 0x1e4   : > { %v520_v54 = vpop.trf.xlu1 }
 0x1e5   : > { %2478 = vmatmul.mubr.msk.f32.gmra.mrb[54].mxu1 %vm354_vm0, %v520_v54 }
 0x1e6   : > { %853 = vmatprep.mubr.f32.mxu1 %v4496_v0 }
 0x1e8   : > { %v521_v55 = vpop.trf.xlu1 }
 0x1e9   : > { %2479 = vmatmul.mubr.msk.f32.gmra.mrb[56].mxu1 %vm354_vm0, %v521_v55 }
 0x1ea   : > { %859 = vmatprep.mubr.f32.mxu1 %v4496_v0 }
 0x1ec   : > { %v522_v56 = vpop.trf.xlu1 }
 0x1ed   : > { %2480 = vmatmul.mubr.msk.f32.gmra.mrb[58].mxu1 %vm354_vm0, %v522_v56 }
 0x1ee   : > { %865 = vmatprep.mubr.f32.mxu1 %v4496_v0 }
 0x1f0   : > { %v523_v57 = vpop.trf.xlu1 }
 0x1f1   : > { %2481 = vmatmul.mubr.msk.f32.gmra.mrb[60].mxu1 %vm354_vm0, %v523_v57 }
 0x1f2   : > { %871 = vmatprep.mubr.f32.mxu1 %v4496_v0 }
 0x1f4   : > { %v524_v60 = vpop.trf.xlu1 }
 0x1f5   : > { %2482 = vmatmul.mubr.msk.f32.gmra.mrb[62].mxu1 %vm354_vm0, %v524_v60 }
 0x1f6   : > { %1208 = vmatprep.mubr.f32.mxu1 %v445_v59 }
 0x24c   : > { %v3263_v61 = vpop.f32.mrb[0].mxu1 }
 0x24d   : > { %v3265_v62 = vpop.f32.mrb[1].mxu1 }
 0x250   : > { %v3267_v63 = vpop.f32.mrb[2].mxu1 }
 0x251   : > { %v3269_v1 = vpop.f32.mrb[3].mxu1 }
 0x254   : > { %v3271_v3 = vpop.f32.mrb[4].mxu1 }
 0x255   : > { %v878_v4 = vmax.f32 %v3263_v61, %v3271_v3  ;;  %v3275_v5 = vpop.f32.mrb[5].mxu1 }
 0x256   : > { %v915_v6 = vmax.f32 %v3265_v62, %v3275_v5 }
 0x258   : > { %v3279_v7 = vpop.f32.mrb[6].mxu1 }
 0x259   : > { %v879_v8 = vmax.f32 %v3267_v63, %v3279_v7  ;;  %v3283_v9 = vpop.f32.mrb[7].mxu1 }
 0x25a   : > { %v916_v10 = vmax.f32 %v3269_v1, %v3283_v9 }
 0x25c   : > { %v3287_v11 = vpop.f32.mrb[8].mxu1 }
 0x25d   : > { %v880_v12 = vmax.f32 %v878_v4, %v3287_v11  ;;  %v3290_v13 = vpop.f32.mrb[9].mxu1 }
 0x25e   : > { %v917_v14 = vmax.f32 %v915_v6, %v3290_v13 }
 0x260   : > { %v3293_v15 = vpop.f32.mrb[10].mxu1 }
 0x261   : > { %v881_v16 = vmax.f32 %v879_v8, %v3293_v15  ;;  %v3296_v17 = vpop.f32.mrb[11].mxu1 }
 0x262   : > { %v918_v18 = vmax.f32 %v916_v10, %v3296_v17 }
 0x264   : > { %v3299_v19 = vpop.f32.mrb[12].mxu1 }
 0x265   : > { %v882_v20 = vmax.f32 %v880_v12, %v3299_v19  ;;  %v3302_v21 = vpop.f32.mrb[13].mxu1 }
 0x266   : > { %v919_v22 = vmax.f32 %v917_v14, %v3302_v21 }
 0x268   : > { %v3305_v23 = vpop.f32.mrb[14].mxu1 }
 0x269   : > { %v883_v25 = vmax.f32 %v881_v16, %v3305_v23  ;;  %v3308_v26 = vpop.f32.mrb[15].mxu1 }
 0x26a   : > { %v920_v27 = vmax.f32 %v918_v18, %v3308_v26 }
 0x26c   : > { %v3311_v28 = vpop.f32.mrb[16].mxu1 }
 0x26d   : > { %v884_v29 = vmax.f32 %v882_v20, %v3311_v28  ;;  %v3314_v30 = vpop.f32.mrb[17].mxu1 }
 0x26e   : > { %v921_v31 = vmax.f32 %v919_v22, %v3314_v30 }
 0x270   : > { %v3317_v32 = vpop.f32.mrb[18].mxu1 }
 0x271   : > { %v885_v33 = vmax.f32 %v883_v25, %v3317_v32  ;;  %v3320_v34 = vpop.f32.mrb[19].mxu1 }
 0x272   : > { %v922_v35 = vmax.f32 %v920_v27, %v3320_v34 }
 0x274   : > { %v3323_v36 = vpop.f32.mrb[20].mxu1 }
 0x275   : > { %v886_v37 = vmax.f32 %v884_v29, %v3323_v36  ;;  %v3326_v38 = vpop.f32.mrb[21].mxu1 }
 0x276   : > { %4601 = vst [vmem:[#allocation9_spill] sm:$0xff] %v3326_v38  ;;  %v923_v39 = vmax.f32 %v921_v31, %v3326_v38 }
 0x278   : > { %v3329_v40 = vpop.f32.mrb[22].mxu1 }
 0x279   : > { %v887_v41 = vmax.f32 %v885_v33, %v3329_v40  ;;  %v3332_v42 = vpop.f32.mrb[23].mxu1 }
 0x27a   : > { %4602 = vst [vmem:[#allocation10_spill] sm:$0xff] %v3332_v42  ;;  %v924_v43 = vmax.f32 %v922_v35, %v3332_v42 }
 0x27c   : > { %v3335_v44 = vpop.f32.mrb[24].mxu1 }
 0x27d   : > { %v888_v45 = vmax.f32 %v886_v37, %v3335_v44  ;;  %v3338_v46 = vpop.f32.mrb[25].mxu1 }
 0x27e   : > { %4603 = vst [vmem:[#allocation11_spill] sm:$0xff] %v3338_v46  ;;  %v925_v47 = vmax.f32 %v923_v39, %v3338_v46 }
 0x280   : > { %v3341_v48 = vpop.f32.mrb[26].mxu1 }
 0x281   : > { %v889_v49 = vmax.f32 %v887_v41, %v3341_v48  ;;  %v3344_v50 = vpop.f32.mrb[27].mxu1 }
 0x282   : > { %4604 = vst [vmem:[#allocation12_spill] sm:$0xff] %v3344_v50  ;;  %v926_v51 = vmax.f32 %v924_v43, %v3344_v50 }
 0x284   : > { %v3347_v52 = vpop.f32.mrb[28].mxu1 }
 0x285   : > { %v890_v53 = vmax.f32 %v888_v45, %v3347_v52  ;;  %v3350_v54 = vpop.f32.mrb[29].mxu1 }
 0x286   : > { %4605 = vst [vmem:[#allocation13_spill] sm:$0xff] %v3350_v54  ;;  %v927_v55 = vmax.f32 %v925_v47, %v3350_v54 }
 0x288   : > { %v3353_v56 = vpop.f32.mrb[30].mxu1 }
 0x289   : > { %v891_v57 = vmax.f32 %v889_v49, %v3353_v56  ;;  %v3356_v59 = vpop.f32.mrb[31].mxu1 }
 0x28a   : > { %4606 = vst [vmem:[#allocation14_spill] sm:$0xff] %v3356_v59  ;;  %v928_v60 = vmax.f32 %v926_v51, %v3356_v59 }
 0x28c   : > { %v3359_v4 = vpop.f32.mrb[32].mxu1 }
 0x28d   : > { %v892_v6 = vmax.f32 %v890_v53, %v3359_v4  ;;  %v3362_v8 = vpop.f32.mrb[33].mxu1 }
 0x28e   : > { %4607 = vst [vmem:[#allocation15_spill] sm:$0xff] %v3362_v8  ;;  %v929_v10 = vmax.f32 %v927_v55, %v3362_v8 }
 0x290   : > { %v3365_v12 = vpop.f32.mrb[34].mxu1 }
 0x291   : > { %v893_v14 = vmax.f32 %v891_v57, %v3365_v12  ;;  %v3368_v16 = vpop.f32.mrb[35].mxu1 }
 0x292   : > { %4608 = vst [vmem:[#allocation16_spill] sm:$0xff] %v3368_v16  ;;  %v930_v18 = vmax.f32 %v928_v60, %v3368_v16 }
 0x294   : > { %v3371_v20 = vpop.f32.mrb[36].mxu1 }
 0x295   : > { %v894_v22 = vmax.f32 %v892_v6, %v3371_v20  ;;  %v3374_v25 = vpop.f32.mrb[37].mxu1 }
 0x296   : > { %4609 = vst [vmem:[#allocation17_spill] sm:$0xff] %v3374_v25  ;;  %v931_v27 = vmax.f32 %v929_v10, %v3374_v25 }
 0x298   : > { %v3377_v29 = vpop.f32.mrb[38].mxu1 }
 0x299   : > { %v895_v31 = vmax.f32 %v893_v14, %v3377_v29  ;;  %v3380_v33 = vpop.f32.mrb[39].mxu1 }
 0x29a   : > { %4610 = vst [vmem:[#allocation18_spill] sm:$0xff] %v3380_v33  ;;  %v932_v35 = vmax.f32 %v930_v18, %v3380_v33 }
 0x29c   : > { %v3383_v37 = vpop.f32.mrb[40].mxu1 }
 0x29d   : > { %v896_v39 = vmax.f32 %v894_v22, %v3383_v37  ;;  %v3386_v41 = vpop.f32.mrb[41].mxu1 }
 0x29e   : > { %4611 = vst [vmem:[#allocation19_spill] sm:$0xff] %v3386_v41  ;;  %v933_v43 = vmax.f32 %v931_v27, %v3386_v41 }
 0x2a0   : > { %v3389_v45 = vpop.f32.mrb[42].mxu1 }
 0x2a1   : > { %v897_v47 = vmax.f32 %v895_v31, %v3389_v45  ;;  %v3392_v49 = vpop.f32.mrb[43].mxu1 }
 0x2a2   : > { %4612 = vst [vmem:[#allocation20_spill] sm:$0xff] %v3392_v49  ;;  %v934_v51 = vmax.f32 %v932_v35, %v3392_v49 }
 0x2a4   : > { %v3395_v53 = vpop.f32.mrb[44].mxu1 }
 0x2a5   : > { %v898_v55 = vmax.f32 %v896_v39, %v3395_v53  ;;  %v3398_v57 = vpop.f32.mrb[45].mxu1 }
 0x2a6   : > { %4613 = vst [vmem:[#allocation21_spill] sm:$0xff] %v3398_v57  ;;  %v935_v60 = vmax.f32 %v933_v43, %v3398_v57 }
 0x2a8   : > { %v3401_v6 = vpop.f32.mrb[46].mxu1 }
 0x2a9   : > { %4614 = vst [vmem:[#allocation22_spill] sm:$0xff] %v3401_v6  ;;  %v899_v10 = vmax.f32 %v897_v47, %v3401_v6  ;;  %v3404_v14 = vpop.f32.mrb[47].mxu1 }
 0x2aa   : > { %4615 = vst [vmem:[#allocation23_spill] sm:$0xff] %v3404_v14  ;;  %v936_v18 = vmax.f32 %v934_v51, %v3404_v14 }
 0x2ac   : > { %v3407_v22 = vpop.f32.mrb[48].mxu1 }
 0x2ad   : > { %4616 = vst [vmem:[#allocation24_spill] sm:$0xff] %v3407_v22  ;;  %v900_v27 = vmax.f32 %v898_v55, %v3407_v22  ;;  %v3410_v31 = vpop.f32.mrb[49].mxu1 }
 0x2ae   : > { %4617 = vst [vmem:[#allocation25_spill] sm:$0xff] %v3410_v31  ;;  %v937_v35 = vmax.f32 %v935_v60, %v3410_v31 }
 0x2b0   : > { %v3413_v39 = vpop.f32.mrb[50].mxu1 }
 0x2b1   : > { %4618 = vst [vmem:[#allocation26_spill] sm:$0xff] %v3413_v39  ;;  %v901_v43 = vmax.f32 %v899_v10, %v3413_v39  ;;  %v3416_v2 = vpop.f32.mrb[51].mxu1 }
 0x2b2   : > { %4619 = vst [vmem:[#allocation27_spill] sm:$0xff] %v3416_v2  ;;  %v938_v47 = vmax.f32 %v936_v18, %v3416_v2 }
 0x2b4   : > { %v3419_v0 = vpop.f32.mrb[52].mxu1 }
 0x2b5   : > { %4620 = vst [vmem:[#allocation28_spill] sm:$0xff] %v3419_v0  ;;  %v902_v51 = vmax.f32 %v900_v27, %v3419_v0  ;;  %v3422_v24 = vpop.f32.mrb[53].mxu1 }
 0x2b6   : > { %4621 = vst [vmem:[#allocation29_spill] sm:$0xff] %v3422_v24  ;;  %v939_v55 = vmax.f32 %v937_v35, %v3422_v24 }
 0x2b8   : > { %v3425_v58 = vpop.f32.mrb[54].mxu1 }
 0x2b9   : > { %4622 = vst [vmem:[#allocation30_spill] sm:$0xff] %v3425_v58  ;;  %v903_v60 = vmax.f32 %v901_v43, %v3425_v58  ;;  %v3428_v31 = vpop.f32.mrb[55].mxu1 }
 0x2ba   : > { %4623 = vst [vmem:[#allocation31_spill] sm:$0xff] %v3428_v31  ;;  %v940_v10 = vmax.f32 %v938_v47, %v3428_v31 }
 0x2bc   : > { %v3431_v14 = vpop.f32.mrb[56].mxu1 }
 0x2bd   : > { %4624 = vst [vmem:[#allocation32_spill] sm:$0xff] %v3431_v14  ;;  %v904_v18 = vmax.f32 %v902_v51, %v3431_v14  ;;  %v3434_v2 = vpop.f32.mrb[57].mxu1 }
 0x2be   : > { %4625 = vst [vmem:[#allocation33_spill] sm:$0xff] %v3434_v2  ;;  %v941_v27 = vmax.f32 %v939_v55, %v3434_v2 }
 0x2c0   : > { %v3437_v57 = vpop.f32.mrb[58].mxu1 }
 0x2c1   : > { %4626 = vst [vmem:[#allocation34_spill] sm:$0xff] %v3437_v57  ;;  %v905_v35 = vmax.f32 %v903_v60, %v3437_v57  ;;  %v3440_v24 = vpop.f32.mrb[59].mxu1 }
 0x2c2   : > { %4627 = vst [vmem:[#allocation35_spill] sm:$0xff] %v3440_v24  ;;  %v942_v43 = vmax.f32 %v940_v10, %v3440_v24 }
 0x2c4   : > { %v3443_v49 = vpop.f32.mrb[60].mxu1 }
 0x2c5   : > { %4628 = vst [vmem:[#allocation36_spill] sm:$0xff] %v3443_v49  ;;  %v906_v47 = vmax.f32 %v904_v18, %v3443_v49  ;;  %v3446_v31 = vpop.f32.mrb[61].mxu1  ;;  %v4647_v49 = vld [vmem:[#allocation33_spill] sm:$0xff] }
 0x2c6   : > { %v943_v51 = vmax.f32 %v941_v27, %v3446_v31 }
 0x2c8   : > { %v873_v41 = vpop.f32.mrb[62].mxu1 }
 0x2c9   : > { %v907_v33 = vmax.f32 %v905_v35, %v873_v41  ;;  %v875_v25 = vpop.f32.mrb[63].mxu1  ;;  %v4648_v57 = vld [vmem:[#allocation35_spill] sm:$0xff] }
 0x2ca   : > { %v944_v55 = vmax.f32 %v942_v43, %v875_v25 }
 0x2cb   : > { %v908_v2 = vmax.f32 %v906_v47, %v907_v33 }
 0x2cc   : > { %v945_v16 = vmax.f32 %v943_v51, %v944_v55 }
 0x2cd   : > { %v909_v8 = vrot.slane %v908_v2, 4 }
 0x2ce   : > { %v946_v60 = vrot.slane %v945_v16, 4 }
 0x2cf   : > { %v910_v59 = vmax.f32 %v908_v2, %v909_v8  ;;  %v4642_v8 = vld [vmem:[#allocation23_spill] sm:$0xff]  ;;  %v4643_v2 = vld [vmem:[#allocation25_spill] sm:$0xff] }
 0x2d0   : > { %v947_v54 = vmax.f32 %v945_v16, %v946_v60 }
 0x2d1   : > { %v911_v50 = vrot.slane %v910_v59, 2 }
 0x2d2   : > { %v948_v10 = vrot.slane %v947_v54, 2 }
 0x2d3   : > { %v912_v24 = vmax.f32 %v910_v59, %v911_v50 }
 0x2d4   : > { %v949_v46 = vmax.f32 %v947_v54, %v948_v10  ;;  %v4638_v54 = vld [vmem:[#allocation18_spill] sm:$0xff] }
 0x2d5   : > { %v913_v42 = vrot.slane %v912_v24, 1 }
 0x2d6   : > { %v950_v38 = vrot.slane %v949_v46, 1 }
 0x2d7   : > { %v3449_v18 = vmax.f32 %v912_v24, %v913_v42  ;;  %v4639_v42 = vld [vmem:[#allocation19_spill] sm:$0xff]  ;;  %v4640_v24 = vld [vmem:[#allocation20_spill] sm:$0xff] }
 0x2d8   : > { %v3486_v16 = vmax.f32 %v949_v46, %v950_v38 }
 0x2d9   : > { %v1014_v27 = vsub.f32 %v873_v41, %v3449_v18  ;;  %v4636_v41 = vld [vmem:[#allocation16_spill] sm:$0xff]  ;;  %v4649_v58 = vsub.f32 %v3263_v61, %v3449_v18  ;;  %v4650_v39 = vsub.f32 %v3267_v63, %v3449_v18  ;;  %v4651_v22 = vsub.f32 %v3271_v3, %v3449_v18 }
 0x2da   : > { %v1015_v46 = vsub.f32 %v875_v25, %v3486_v16  ;;  %v953_v47 = vsub.f32 %v3265_v62, %v3486_v16  ;;  %v955_v51 = vsub.f32 %v3269_v1, %v3486_v16  ;;  %v957_v55 = vsub.f32 %v3275_v5, %v3486_v16  ;;  %v4633_v62 = vld [vmem:[#allocation13_spill] sm:$0xff]  ;;  %v4634_v1 = vld [vmem:[#allocation14_spill] sm:$0xff]  ;;  %v4635_v5 = vld [vmem:[#allocation15_spill] sm:$0xff] }
 0x2db   : > { %v959_v60 = vsub.f32 %v3283_v9, %v3486_v16  ;;  %v961_v10 = vsub.f32 %v3290_v13, %v3486_v16  ;;  %v1140_v43 = vmul.f32 1.442695, %v1014_v27  ;;  %v963_v38 = vsub.f32 %v3296_v17, %v3486_v16  ;;  %v4629_v9 = vld [vmem:[#allocation9_spill] sm:$0xff]  ;;  %v4630_v13 = vld [vmem:[#allocation10_spill] sm:$0xff]  ;;  %v4631_v17 = vld [vmem:[#allocation11_spill] sm:$0xff] }
 0x2dc   : > { %v965_v25 = vsub.f32 %v3302_v21, %v3486_v16  ;;  %v1142_v59 = vmul.f32 1.442695, %v1015_v46  ;;  %v4632_v21 = vld [vmem:[#allocation12_spill] sm:$0xff]  ;;  %v4637_v46 = vld [vmem:[#allocation17_spill] sm:$0xff]  ;;  %v4644_v27 = vld [vmem:[#allocation27_spill] sm:$0xff]  ;;  %v4652_v50 = vsub.f32 %v3279_v7, %v3449_v18  ;;  %v4655_v63 = vsub.f32 %v3299_v19, %v3449_v18 }
 0x2dd   : > { %2712 = vpow2.f32 %v1140_v43  ;;  %v1016_v0 = vmul.f32 1.442695, %v4649_v58  ;;  %v1020_v33 = vmul.f32 1.442695, %v4650_v39  ;;  %v1024_v35 = vmul.f32 1.442695, %v4651_v22 }
 0x2de   : > { %2714 = vpow2.f32 %v1142_v59  ;;  %v1028_v6 = vmul.f32 1.442695, %v4652_v50  ;;  %v4653_v43 = vsub.f32 %v3287_v11, %v3449_v18  ;;  %v4654_v58 = vsub.f32 %v3293_v15, %v3449_v18 }
 0x2df   : > { %2716 = vpow2.f32 %v1016_v0  ;;  %v1040_v3 = vmul.f32 1.442695, %v4655_v63  ;;  %v4656_v22 = vsub.f32 %v3305_v23, %v3449_v18  ;;  %v4657_v11 = vsub.f32 %v3311_v28, %v3449_v18 }
 0x2e0   : > { %v1032_v14 = vmul.f32 1.442695, %v4653_v43  ;;  %v1036_v61 = vmul.f32 1.442695, %v4654_v58  ;;  %2718 = vpow2.f32 %v1020_v33  ;;  %v4658_v0 = vsub.f32 %v3317_v32, %v3449_v18 }
 0x2e1   : > { %2720 = vpow2.f32 %v1024_v35  ;;  %v1044_v7 = vmul.f32 1.442695, %v4656_v22  ;;  %v1048_v39 = vmul.f32 1.442695, %v4657_v11  ;;  %v1018_v35 = vmul.f32 1.442695, %v953_v47 }
 0x2e2   : > { %2722 = vpow2.f32 %v1028_v6  ;;  %v1052_v15 = vmul.f32 1.442695, %v4658_v0  ;;  %v1022_v33 = vmul.f32 1.442695, %v955_v51  ;;  %v1026_v6 = vmul.f32 1.442695, %v957_v55 }
 0x2e3   : > { %2724 = vpow2.f32 %v1032_v14  ;;  %v1030_v50 = vmul.f32 1.442695, %v959_v60  ;;  %v1034_v14 = vmul.f32 1.442695, %v961_v10  ;;  %v1038_v32 = vmul.f32 1.442695, %v963_v38 }
 0x2e4   : > { %2726 = vpow2.f32 %v1036_v61  ;;  %v1042_v58 = vmul.f32 1.442695, %v965_v25  ;;  %v4659_v47 = vsub.f32 %v3308_v26, %v3486_v16  ;;  %v4660_v60 = vsub.f32 %v3314_v30, %v3486_v16 }
 0x2e5   : > { %2728 = vpow2.f32 %v1040_v3  ;;  %v4661_v38 = vsub.f32 %v3320_v34, %v3486_v16  ;;  %v4662_v26 = vsub.f32 %v3323_v36, %v3449_v18  ;;  %v4663_v30 = vsub.f32 %v4629_v9, %v3486_v16 }
 0x2e6   : > { %2730 = vpow2.f32 %v1044_v7  ;;  %v1046_v51 = vmul.f32 1.442695, %v4659_v47  ;;  %v1050_v10 = vmul.f32 1.442695, %v4660_v60  ;;  %v4664_v34 = vsub.f32 %v3329_v40, %v3449_v18 }
 0x2e7   : > { %v3609_v19 = vpop.eup %2712  ;;  %2732 = vpow2.f32 %v1048_v39  ;;  %v1054_v25 = vmul.f32 1.442695, %v4661_v38  ;;  %v1056_v22 = vmul.f32 1.442695, %v4662_v26  ;;  %v1058_v11 = vmul.f32 1.442695, %v4663_v30 }
 0x2e8   : > { %v3611_v23 = vpop.eup %2714  ;;  %2734 = vpow2.f32 %v1052_v15  ;;  %v1060_v0 = vmul.f32 1.442695, %v4664_v34  ;;  %v4665_v15 = vsub.f32 %v4630_v13, %v3486_v16  ;;  %v4673_v34 = vsub.f32 %v4634_v1, %v3486_v16 }
 0x2e9   : > { %v2717_v28 = vpop.eup %2716  ;;  %2736 = vpow2.f32 %v1018_v35 }
 0x2ea   : > { %v2719_v59 = vpop.eup %2718  ;;  %2738 = vpow2.f32 %v1022_v33  ;;  %v1062_v36 = vmul.f32 1.442695, %v4665_v15 }
 0x2eb   : > { %v3613_v43 = vpop.eup %2720  ;;  %2740 = vpow2.f32 %v1026_v6  ;;  %v2533_v35 = vpack.c.bf16 %v2719_v59, %v2717_v28  ;;  %v4667_v59 = vsub.f32 %v4631_v17, %v3486_v16 }
 0x2ec   : > { %v3615_v61 = vpop.eup %2722  ;;  %2742 = vpow2.f32 %v1030_v50 }
 0x2ed   : > { %v3620_v55 = vpop.eup %2724  ;;  %2744 = vpow2.f32 %v1034_v14  ;;  %v2537_v6 = vpack.c.bf16 %v3615_v61, %v3613_v43  ;;  %v4666_v14 = vsub.f32 %v3335_v44, %v3449_v18  ;;  %v1066_v43 = vmul.f32 1.442695, %v4667_v59 }
 0x2ee   : > { %v3625_v63 = vpop.eup %2726  ;;  %2746 = vpow2.f32 %v1038_v32  ;;  %v4668_v61 = vsub.f32 %v3341_v48, %v3449_v18  ;;  %v4669_v44 = vsub.f32 %v4632_v21, %v3486_v16  ;;  %v4671_v48 = vsub.f32 %v4633_v62, %v3486_v16 }
 0x2ef   : > { %v3630_v3 = vpop.eup %2728  ;;  %2748 = vpow2.f32 %v1042_v58  ;;  %v2541_v9 = vpack.c.bf16 %v3625_v63, %v3620_v55  ;;  %v1064_v32 = vmul.f32 1.442695, %v4666_v14  ;;  %v4670_v63 = vsub.f32 %v3347_v52, %v3449_v18 }
 0x2f0   : > { %v3635_v7 = vpop.eup %2730  ;;  %2750 = vpow2.f32 %v1046_v51  ;;  %v1068_v47 = vmul.f32 1.442695, %v4668_v61  ;;  %v1070_v60 = vmul.f32 1.442695, %v4669_v44  ;;  %v1074_v26 = vmul.f32 1.442695, %v4671_v48 }
 0x2f1   : > { %v3640_v39 = vpop.eup %2732  ;;  %2752 = vpow2.f32 %v1050_v10  ;;  %v2545_v50 = vpack.c.bf16 %v3635_v7, %v3630_v3  ;;  %v1072_v38 = vmul.f32 1.442695, %v4670_v63  ;;  %v4672_v21 = vsub.f32 %v3353_v56, %v3449_v18 }
 0x2f2   : > { %v3648_v33 = vpop.eup %2734  ;;  %2754 = vpow2.f32 %v1054_v25  ;;  %v4674_v62 = vsub.f32 %v3359_v4, %v3449_v18  ;;  %v4675_v56 = vsub.f32 %v4635_v5, %v3486_v16  ;;  %v4677_v4 = vsub.f32 %v4636_v41, %v3486_v16 }
 0x2f3   : > { %v2737_v40 = vpop.eup %2736  ;;  %2756 = vpow2.f32 %v1056_v22  ;;  %v2549_v13 = vpack.c.bf16 %v3648_v33, %v3640_v39  ;;  %v1076_v30 = vmul.f32 1.442695, %v4672_v21  ;;  %v4678_v5 = vsub.f32 %v3371_v20, %v3449_v18 }
 0x2f4   : > { %v2739_v28 = vpop.eup %2738  ;;  %2758 = vpow2.f32 %v1058_v11  ;;  %v1082_v14 = vmul.f32 1.442695, %v4675_v56  ;;  %v4681_v20 = vsub.f32 %v4638_v54, %v3486_v16  ;;  %v4684_v54 = vsub.f32 %v3389_v45, %v3449_v18 }
 0x2f5   : > { %v2741_v58 = vpop.eup %2740  ;;  %2760 = vpow2.f32 %v1060_v0  ;;  %v2531_v51 = vpack.c.bf16 %v2739_v28, %v2737_v40  ;;  %v1078_v0 = vmul.f32 1.442695, %v4673_v34  ;;  %v4676_v28 = vsub.f32 %v3365_v12, %v3449_v18  ;;  %v4687_v34 = vld [vmem:[#allocation21_spill] sm:$0xff] }
 0x2f6   : > { %v2743_v55 = vpop.eup %2742  ;;  %2762 = vpow2.f32 %v1062_v36  ;;  %v1080_v36 = vmul.f32 1.442695, %v4674_v62  ;;  %v4679_v12 = vsub.f32 %v4637_v46, %v3486_v16  ;;  %v4682_v46 = vsub.f32 %v3383_v37, %v3449_v18 }
 0x2f7   : > { %v2745_v10 = vpop.eup %2744  ;;  %2764 = vpow2.f32 %v1064_v32  ;;  %2532 = vmatprep.subr.bf16.mxu1 %v2531_v51  ;;  %v2535_v17 = vpack.c.bf16 %v2743_v55, %v2741_v58  ;;  %v1084_v1 = vmul.f32 1.442695, %v4676_v28  ;;  %v1086_v58 = vmul.f32 1.442695, %v4677_v4  ;;  %v4692_v28 = vld [vmem:[#allocation24_spill] sm:$0xff] }
 0x2f8   : > { %v2747_v25 = vpop.eup %2746  ;;  %2766 = vpow2.f32 %v1066_v43  ;;  %2534 = vmatpush1.bf16.msra.mxu1 %v2533_v35  ;;  %v1090_v51 = vmul.f32 1.442695, %v4679_v12  ;;  %v1100_v21 = vmul.f32 1.442695, %v4684_v54  ;;  %v4686_v3 = vsub.f32 %v3395_v53, %v3449_v18 }
 0x2f9   : > { %v2749_v22 = vpop.eup %2748  ;;  %2768 = vpow2.f32 %v1068_v47  ;;  %2536 = vmatprep.subr.bf16.mxu1 %v2535_v17  ;;  %v2539_v11 = vpack.c.bf16 %v2747_v25, %v2745_v10  ;;  %v1088_v47 = vmul.f32 1.442695, %v4678_v5  ;;  %v4688_v45 = vsub.f32 %v4687_v34, %v3486_v16 }
 0x2fa   : > { %v2751_v52 = vpop.eup %2750  ;;  %2770 = vpow2.f32 %v1070_v60  ;;  %v4680_v60 = vsub.f32 %v3377_v29, %v3449_v18  ;;  %v4683_v29 = vsub.f32 %v4639_v42, %v3486_v16  ;;  %v1104_v7 = vmul.f32 1.442695, %v4686_v3 }
 0x2fb   : > { %v2753_v15 = vpop.eup %2752  ;;  %2772 = vpow2.f32 %v1072_v38  ;;  %v2543_v35 = vpack.c.bf16 %v2751_v52, %v2749_v22  ;;  %v1094_v38 = vmul.f32 1.442695, %v4681_v20  ;;  %v4691_v56 = vsub.f32 %v4642_v8, %v3486_v16 }
 0x2fc   : > { %v2755_v40 = vpop.eup %2754  ;;  %2774 = vpow2.f32 %v1074_v26  ;;  %2538 = vmatpush1.bf16.msra.mxu1 %v2537_v6  ;;  %v1092_v41 = vmul.f32 1.442695, %v4680_v60  ;;  %v1098_v48 = vmul.f32 1.442695, %v4683_v29  ;;  %v4693_v39 = vsub.f32 %v4692_v28, %v3449_v18  ;;  %v4704_v29 = vld [vmem:[#allocation31_spill] sm:$0xff] }
 0x2fd   : > { %v2757_v32 = vpop.eup %2756  ;;  %2776 = vpow2.f32 %v1076_v30  ;;  %2540 = vmatprep.subr.bf16.mxu1 %v2539_v11  ;;  %v2547_v59 = vpack.c.bf16 %v2755_v40, %v2753_v15  ;;  %v4685_v11 = vsub.f32 %v4640_v24, %v3486_v16  ;;  %v4689_v24 = vld [vmem:[#allocation22_spill] sm:$0xff] }
 0x2fe   : > { %v2759_v43 = vpop.eup %2758  ;;  %2778 = vpow2.f32 %v1078_v0  ;;  %v1106_v0 = vmul.f32 1.442695, %v4688_v45  ;;  %v1112_v33 = vmul.f32 1.442695, %v4693_v39 }
 0x2ff   : > { %v2761_v61 = vpop.eup %2760  ;;  %2780 = vpow2.f32 %v1080_v36  ;;  %v1102_v42 = vmul.f32 1.442695, %v4685_v11  ;;  %v4690_v36 = vsub.f32 %v4689_v24, %v3449_v18  ;;  %v4708_v11 = vsub.f32 %v4647_v49, %v3486_v16 }
 0x300   : > { %v2763_v6 = vpop.eup %2762  ;;  %2782 = vpow2.f32 %v1082_v14  ;;  %2542 = vmatpush1.bf16.msra.mxu1 %v2541_v9  ;;  %v2553_v55 = vpack.c.bf16 %v2761_v61, %v2757_v32  ;;  %v1096_v9 = vmul.f32 1.442695, %v4682_v46  ;;  %v1110_v14 = vmul.f32 1.442695, %v4691_v56 }
 0x301   : > { %v2765_v44 = vpop.eup %2764  ;;  %2784 = vpow2.f32 %v1084_v1  ;;  %2544 = vmatprep.subr.bf16.mxu1 %v2543_v35  ;;  %v2551_v10 = vpack.c.bf16 %v2763_v6, %v2759_v43  ;;  %v1108_v35 = vmul.f32 1.442695, %v4690_v36  ;;  %v4694_v1 = vsub.f32 %v4643_v2, %v3486_v16 }
 0x302   : > { %v2767_v63 = vpop.eup %2766  ;;  %2786 = vpow2.f32 %v1086_v58  ;;  %v4695_v58 = vld [vmem:[#allocation26_spill] sm:$0xff]  ;;  %v4697_v6 = vsub.f32 %v4644_v27, %v3486_v16 }
 0x303   : > { %v2769_v17 = vpop.eup %2768  ;;  %2788 = vpow2.f32 %v1088_v47  ;;  %v4696_v61 = vsub.f32 %v4695_v58, %v3449_v18 }
 0x304   : > { %v2771_v25 = vpop.eup %2770  ;;  %2790 = vpow2.f32 %v1090_v51  ;;  %2546 = vmatpush1.bf16.msra.mxu1 %v2545_v50  ;;  %v2557_v26 = vpack.c.bf16 %v2769_v17, %v2765_v44  ;;  %v1118_v12 = vmul.f32 1.442695, %v4697_v6  ;;  %v4698_v44 = vld [vmem:[#allocation28_spill] sm:$0xff]  ;;  %v4702_v17 = vld [vmem:[#allocation30_spill] sm:$0xff] }
 0x305   : > { %v2773_v22 = vpop.eup %2772  ;;  %2792 = vpow2.f32 %v1092_v41  ;;  %2548 = vmatprep.subr.bf16.mxu1 %v2547_v59  ;;  %v2555_v37 = vpack.c.bf16 %v2771_v25, %v2767_v63  ;;  %v1114_v59 = vmul.f32 1.442695, %v4694_v1  ;;  %v1116_v8 = vmul.f32 1.442695, %v4696_v61  ;;  %v4700_v41 = vld [vmem:[#allocation29_spill] sm:$0xff] }
 0x306   : > { %v2775_v30 = vpop.eup %2774  ;;  %2794 = vpow2.f32 %v1094_v38  ;;  %v4699_v2 = vsub.f32 %v4698_v44, %v3449_v18  ;;  %v4703_v46 = vsub.f32 %v4702_v17, %v3449_v18 }
 0x307   : > { %v2777_v52 = vpop.eup %2776  ;;  %2796 = vpow2.f32 %v1096_v9 }
 0x308   : > { %v2779_v50 = vpop.eup %2778  ;;  %2798 = vpow2.f32 %v1098_v48  ;;  %2550 = vmatpush1.bf16.msra.mxu1 %v2549_v13  ;;  %v2561_v15 = vpack.c.bf16 %v2777_v52, %v2773_v22  ;;  %v1124_v27 = vmul.f32 1.442695, %v4703_v46  ;;  %v4705_v48 = vsub.f32 %v4704_v29, %v3486_v16 }
 0x309   : > { %v2781_v62 = vpop.eup %2780  ;;  %2800 = vpow2.f32 %v1100_v21  ;;  %2552 = vmatprep.subr.bf16.mxu1 %v2551_v10  ;;  %v2559_v53 = vpack.c.bf16 %v2779_v50, %v2775_v30  ;;  %v4701_v10 = vsub.f32 %v4700_v41, %v3486_v16  ;;  %v4706_v21 = vld [vmem:[#allocation32_spill] sm:$0xff] }
 0x30a   : > { %v2783_v40 = vpop.eup %2782  ;;  %2802 = vpow2.f32 %v1102_v42  ;;  %v1126_v22 = vmul.f32 1.442695, %v4705_v48  ;;  %v1130_v42 = vmul.f32 1.442695, %v4708_v11  ;;  %v1313_v11 = vld [vmem:[%s4490_s5 + $0x8] sm:$0xff] }
 0x30b   : > { %v2785_v32 = vpop.eup %2784  ;;  %2804 = vpow2.f32 %v1104_v7  ;;  %v1122_v63 = vmul.f32 1.442695, %v4701_v10  ;;  %v4709_v7 = vld [vmem:[#allocation34_spill] sm:$0xff]  ;;  %v4717_v10 = vmov 0.0  }
 0x30c   : > { %v2787_v13 = vpop.eup %2786  ;;  %2806 = vpow2.f32 %v1106_v0  ;;  %2554 = vmatpush1.bf16.msra.mxu1 %v2553_v55  ;;  %v2565_v43 = vpack.c.bf16 %v2785_v32, %v2781_v62  ;;  %v1120_v55 = vmul.f32 1.442695, %v4699_v2  ;;  %v4710_v50 = vsub.f32 %v4709_v7, %v3449_v18 }
 0x30d   : > { %v2789_v4 = vpop.eup %2788  ;;  %2808 = vpow2.f32 %v1108_v35  ;;  %2556 = vmatprep.subr.bf16.mxu1 %v2555_v37  ;;  %v2563_v5 = vpack.c.bf16 %v2787_v13, %v2783_v40  ;;  %v4707_v37 = vsub.f32 %v4706_v21, %v3449_v18  ;;  %v4711_v62 = vsub.f32 %v4648_v57, %v3486_v16  ;;  %v4712_v35 = vld [vmem:[#allocation36_spill] sm:$0xff]  ;;  %v1304_v21 = vpop.permute.xlu0 %1303 }
 0x30e   : > { %v2791_v47 = vpop.eup %2790  ;;  %2810 = vpow2.f32 %v1110_v14  ;;  %v1132_v34 = vmul.f32 1.442695, %v4710_v50  ;;  %v4713_v49 = vsub.f32 %v4712_v35, %v3449_v18  ;;  %v4714_v40 = vsub.f32 %v3446_v31, %v3486_v16 }
 0x30f   : > { %v2793_v51 = vpop.eup %2792  ;;  %2812 = vpow2.f32 %v1112_v33  ;;  %v1134_v24 = vmul.f32 1.442695, %v4711_v62 }
 0x310   : > { %v2795_v60 = vpop.eup %2794  ;;  %2814 = vpow2.f32 %v1114_v59  ;;  %2558 = vmatpush1.bf16.msra.mxu1 %v2557_v26  ;;  %v2569_v20 = vpack.c.bf16 %v2793_v51, %v2789_v4  ;;  %v1128_v26 = vmul.f32 1.442695, %v4707_v37  ;;  %v1138_v56 = vmul.f32 1.442695, %v4714_v40 }
 0x311   : > { %v2797_v38 = vpop.eup %2796  ;;  %2816 = vpow2.f32 %v1116_v8  ;;  %2560 = vmatprep.subr.bf16.mxu1 %v2559_v53  ;;  %v2567_v9 = vpack.c.bf16 %v2795_v60, %v2791_v47  ;;  %v4716_v60 = vld [vmem:[#allocation7_spill] sm:$0xff]  ;;  %v1337_v7 = vpop.permute.xlu0 %1336 }
 0x312   : > { %v2799_v25 = vpop.eup %2798  ;;  %2818 = vpow2.f32 %v1118_v12 }
 0x313   : > { %v2801_v54 = vpop.eup %2800  ;;  %2820 = vpow2.f32 %v1120_v55  ;;  %v4715_v55 = vld [vmem:[#allocation8_spill] sm:$0xff] }
 0x314   : > { %v2803_v30 = vpop.eup %2802  ;;  %2822 = vpow2.f32 %v1122_v63  ;;  %2562 = vmatpush1.bf16.msra.mxu1 %v2561_v15  ;;  %v2573_v52 = vpack.c.bf16 %v2801_v54, %v2797_v38  ;;  %v1136_v15 = vmul.f32 1.442695, %v4713_v49  ;;  %v443_v41 = vadd.f32 %v4716_v60, %v4715_v55 }
 0x315   : > { %v2805_v3 = vpop.eup %2804  ;;  %2824 = vpow2.f32 %v1124_v27  ;;  %2564 = vmatprep.subr.bf16.mxu1 %v2563_v5  ;;  %v2571_v45 = vpack.c.bf16 %v2803_v30, %v2799_v25  ;;  %v1312_v30 = vld [vmem:[%s4490_s5] sm:$0xff]  ;;  %v1342_v50 = vpop.permute.xlu0 %1341 }
 0x316   : > { %v2807_v0 = vpop.eup %2806  ;;  %2826 = vpow2.f32 %v1126_v22 }
 0x317   : > { %v2809_v36 = vpop.eup %2808  ;;  %2828 = vpow2.f32 %v1128_v26 }
 0x318   : > { %v2811_v53 = vpop.eup %2810  ;;  %2830 = vpow2.f32 %v1130_v42  ;;  %2566 = vmatpush1.bf16.msra.mxu1 %v2565_v43  ;;  %v2577_v14 = vpack.c.bf16 %v2809_v36, %v2805_v3  ;;  %v1314_v42 = vld [vmem:[%s4490_s5 + $0x10] sm:$0xff]  ;;  %v1316_v3 = vld [vmem:[%s4490_s5 + $0x20] sm:$0xff] }
 0x319   : > { %v2813_v32 = vpop.eup %2812  ;;  %2832 = vpow2.f32 %v1132_v34  ;;  %2568 = vmatprep.subr.bf16.mxu1 %v2567_v9  ;;  %v2575_v28 = vpack.c.bf16 %v2811_v53, %v2807_v0  ;;  %v1327_v34 = vpop.permute.xlu0 %1326 }
 0x31a   : > { %v2815_v57 = vpop.eup %2814  ;;  %2834 = vpow2.f32 %v1134_v24 }
 0x31b   : > { %v2817_v39 = vpop.eup %2816  ;;  %2836 = vpow2.f32 %v1136_v15 }
 0x31c   : > { %v2819_v33 = vpop.eup %2818  ;;  %2838 = vpow2.f32 %v1138_v56  ;;  %2570 = vmatpush1.bf16.msra.mxu1 %v2569_v20  ;;  %v2581_v18 = vpack.c.bf16 %v2817_v39, %v2813_v32 }
 0x31d   : > { %v2821_v13 = vpop.eup %2820  ;;  %2572 = vmatprep.subr.bf16.mxu1 %v2571_v45  ;;  %v2579_v1 = vpack.c.bf16 %v2819_v33, %v2815_v57  ;;  %v1332_v45 = vpop.permute.xlu0 %1331 }
 0x31e   : > { %v2823_v59 = vpop.eup %2822 }
 0x31f   : > { %v2825_v31 = vpop.eup %2824 }
 0x320   : > { %v2827_v16 = vpop.eup %2826  ;;  %2574 = vmatpush1.bf16.msra.mxu1 %v2573_v52  ;;  %v2585_v43 = vpack.c.bf16 %v2825_v31, %v2821_v13  ;;  %v1315_v52 = vld [vmem:[%s4490_s5 + $0x18] sm:$0xff]  ;;  %v1322_v31 = vld [vmem:[%s4491_s6 + $0x20] sm:$0xff] }
 0x321   : > { %v2829_v4 = vpop.eup %2828  ;;  %2576 = vmatprep.subr.bf16.mxu1 %v2575_v28  ;;  %v2583_v58 = vpack.c.bf16 %v2827_v16, %v2823_v59 }
 0x322   : > { %v2831_v61 = vpop.eup %2830 }
 0x323   : > { %v2833_v8 = vpop.eup %2832 }
 0x324   : > { %v2835_v5 = vpop.eup %2834  ;;  %2578 = vmatpush1.bf16.msra.mxu1 %v2577_v14  ;;  %v2589_v47 = vpack.c.bf16 %v2833_v8, %v2829_v4 }
 0x325   : > { %v2837_v6 = vpop.eup %2836  ;;  %2580 = vmatprep.subr.bf16.mxu1 %v2579_v1  ;;  %v2587_v12 = vpack.c.bf16 %v2835_v5, %v2831_v61  ;;  %v4719_v1 = vmov 0  }
 0x326   : > { %v2839_v51 = vpop.eup %2838  ;;  %v2593_v44 = vpack.c.bf16 %v3609_v19, %v2837_v6  ;;  %v457_v19 = vld [vmem:[%s4488_s3] sm:$0xff] }
 0x327   : > { %v2591_v2 = vpack.c.bf16 %v3611_v23, %v2839_v51  ;;  %v1291_v23 = vlaneseq }
 0x328   : > { %2582 = vmatpush1.bf16.msra.mxu1 %v2581_v18 }
 0x329   : > { %2584 = vmatprep.subr.bf16.mxu1 %v2583_v58  ;;  %v3788_v38 = vshrl.u32 %v1291_v23, 7 }
 0x32b   : > { %4718 = vst [vmem:[#allocation9_spill] sm:$0xff] %v3788_v38  ;;  %v1293_v17 = vsub.s32 4, %v3788_v38 }
 0x32c   : > { %2586 = vmatpush1.bf16.msra.mxu1 %v2585_v43  ;;  %v1495_v43 = vld [vmem:[%s4493_s8] sm:$0xff] }
 0x32d   : > { %2588 = vmatprep.subr.bf16.mxu1 %v2587_v12 }
 0x330   : > { %2590 = vmatpush1.bf16.msra.mxu1 %v2589_v47 }
 0x331   : > { %2592 = vmatprep.subr.bf16.mxu1 %v2591_v2 }
 0x334   : > { %2594 = vmatpush1.bf16.msra.mxu1 %v2593_v44 }
 0x337   : > { %1209 = vmatmul.mubr.f32.vlgmr.msra.gmra.mrb[64].mxu1 %v443_v41 }
 0x338   : > { %1442 = vmatprep.mubr.f32.mxu1 %v4717_v10 }
 0x40a   : > { %v1210_v63 = vpop.f32.mrb[64].mxu1 }
 0x40b   : > { %v1212_v20 = vpop.f32.mrb[65].mxu1  ;;  %2840 = vrcp.f32 %v1210_v63 }
 0x40c   : > { %1220 = vmatprep.subr.mxu0 %v1212_v20  ;;  %2842 = vrcp.f32 %v1212_v20 }
 0x40d   : > { %1221 = vmatpush1.msra.mxu0 %v1210_v63 }
 0x40e   : > { %2483 = vmatmul.mubr.msk.f32.vlgmr.msra.gmra.mrb[6].mxu0 %vm354_vm0, %v457_v19 }
 0x40f   : > { %1436 = vmatprep.mubr.f32.mxu0 %v4717_v10 }
 0x415   : > { %v2841_v46 = vpop.eup %2840 }
 0x416   : > { %v2843_v27 = vpop.eup %2842  ;;  %v1294_v9 = vrot.slane %v2841_v46, %v1293_v17 }
 0x417   : > { %v1298_v29 = vrot.slane %v2843_v27, %v1293_v17 }
 0x4e1   : > { %v1286_v25 = vpop.f32.mrb[6].mxu0 }
 0x4e2   : > { %v1299_v48 = vmul.f32 %v1294_v9, %v1286_v25  ;;  %v1288_v22 = vpop.f32.mrb[7].mxu0 }
 0x4e3   : > { %v1300_v54 = vmul.f32 %v1298_v29, %v1288_v22 }
 0x4e4   : > { %v1306_v26 = vadd.f32 %v1304_v21, %v1299_v48 }
 0x4e5   : > { %v1307_v37 = vadd.f32 %v1304_v21, %v1300_v54  ;;  %v1317_v21 = vld [vmem:[%s4490_s5 + $0x28] sm:$0xff] }
 0x4e7   : > { %1372 = vmatprep.subr.mxu0 %v1307_v37  ;;  %2667 = vmatprep.subr.mxu1 %v1307_v37 }
 0x4e8   : > { %1373 = vmatpush1.msra.mxu0 %v1306_v26  ;;  %2668 = vmatpush1.msra.mxu1 %v1306_v26 }
 0x4e9   : > { %2484 = vmatmul.mubr.msk.f32.vlgmr.msra.gmra.mrb[8].mxu0 %vm354_vm0, %v1312_v30  ;;  %2485 = vmatmul.mubr.msk.f32.vlgmr.msra.gmra.mrb[66].mxu1 %vm354_vm0, %v1313_v11 }
 0x4ea   : > { %1448 = vmatprep.mubr.f32.mxu1 %v4717_v10  ;;  %1725 = vmatprep.mubr.f32.mxu0 %v4717_v10 }
 0x4ed   : > { %2486 = vmatmul.mubr.msk.f32.gmra.mrb[68].mxu1 %vm354_vm0, %v1314_v42 }
 0x4ee   : > { %1454 = vmatprep.mubr.f32.mxu1 %v4717_v10 }
 0x4f1   : > { %2487 = vmatmul.mubr.msk.f32.gmra.mrb[70].mxu1 %vm354_vm0, %v1315_v52 }
 0x4f2   : > { %1460 = vmatprep.mubr.f32.mxu1 %v4717_v10 }
 0x4f5   : > { %2488 = vmatmul.mubr.msk.f32.gmra.mrb[72].mxu1 %vm354_vm0, %v1316_v3 }
 0x4f6   : > { %1466 = vmatprep.mubr.f32.mxu1 %v4717_v10 }
 0x4f9   : > { %2489 = vmatmul.mubr.msk.f32.gmra.mrb[74].mxu1 %vm354_vm0, %v1317_v21 }
 0x4fa   : > { %2333 = vmatprep.mubr.f32.mxu1 %v4717_v10 }
 0x5bc   : > { %v1438_v0 = vpop.f32.mrb[8].mxu0  ;;  %v1444_v62 = vpop.f32.mrb[66].mxu1 }
 0x5bd   : > { %v1439_v24 = vadd.f32 %v1438_v0, %v1327_v34  ;;  %v1445_v36 = vadd.f32 %v1444_v62, %v1332_v45  ;;  %v1440_v35 = vpop.f32.mrb[9].mxu0  ;;  %v1446_v49 = vpop.f32.mrb[67].mxu1 }
 0x5be   : > { %v1441_v15 = vadd.f32 %v1440_v35, %v1327_v34  ;;  %v1447_v53 = vadd.f32 %v1446_v49, %v1332_v45 }
 0x5bf   : > { %v2597_v40 = vpack.c.bf16 %v1445_v36, %v1439_v24 }
 0x5c0   : > { %v2595_v56 = vpack.c.bf16 %v1447_v53, %v1441_v15  ;;  %v1450_v14 = vpop.f32.mrb[68].mxu1 }
 0x5c1   : > { %v1451_v32 = vadd.f32 %v1450_v14, %v1337_v7  ;;  %v1452_v28 = vpop.f32.mrb[69].mxu1 }
 0x5c2   : > { %v1453_v57 = vadd.f32 %v1452_v28, %v1337_v7  ;;  %2596 = vmatprep.subr.bf16.mxu0 %v2595_v56 }
 0x5c3   : > { %1500 = vxpose.xlu0.b32.start [1/2] (short) %v1451_v32, 128  ;;  %2598 = vmatpush1.bf16.msra.mxu0 %v2597_v40 }
 0x5c4   : > { %v1456_v39 = vpop.f32.mrb[70].mxu1  ;;  %1532 = vxpose.xlu1.b32.start [1/2] (short) %v1453_v57, 128 }
 0x5c5   : > { %v1457_v33 = vadd.f32 %v1456_v39, %v1342_v50  ;;  %v1458_v18 = vpop.f32.mrb[71].mxu1 }
 0x5c6   : > { %v1459_v13 = vadd.f32 %v1458_v18, %v1342_v50  ;;  %v1323_v50 = vld [vmem:[%s4491_s6 + $0x28] sm:$0xff] }
 0x5c7   : > { %1501 = vxpose.xlu0.b32.end [2/2] (short) %v1457_v33, 128 }
 0x5c8   : > { %1533 = vxpose.xlu1.b32.end [2/2] (short) %v1459_v13, 128  ;;  %v3817_v59 = vpop.f32.mrb[72].mxu1 }
 0x5c9   : > { %v3822_v16 = vpop.f32.mrb[73].mxu1 }
 0x5e6   : > { %2711 = vset.pattern.permute.xlu1 %v4719_v1 }
 0x61e   : > { %1351 = vperm.xlu1 %2711, %v1323_v50  }
 0x628   : > { %1346 = vperm.xlu0 %2710, %v1322_v31  }
 0x62c   : > { %2356 = vperm.xlu0 %2710, %v1495_v43  }
 0x643   : > { %v1516_v4 = vpop.trf.xlu0 }
 0x644   : > { %2490 = vmatmul.mubr.msk.f32.vlgmr.msra.gmra.mrb[10].mxu0 %vm1564_vm1, %v1516_v4  ;;  %v1548_v44 = vpop.trf.xlu1 }
 0x645   : > { %1731 = vmatprep.mubr.f32.mxu0 %v4717_v10 }
 0x647   : > { %v1517_v58 = vpop.trf.xlu0 }
 0x648   : > { %2491 = vmatmul.mubr.msk.f32.gmra.mrb[12].mxu0 %vm1564_vm1, %v1517_v58  ;;  %v1549_v55 = vpop.trf.xlu1 }
 0x649   : > { %1737 = vmatprep.mubr.f32.mxu0 %v4717_v10 }
 0x64b   : > { %v1518_v61 = vpop.trf.xlu0 }
 0x64c   : > { %2492 = vmatmul.mubr.msk.f32.gmra.mrb[14].mxu0 %vm1564_vm1, %v1518_v61  ;;  %v1550_v63 = vpop.trf.xlu1 }
 0x64d   : > { %1743 = vmatprep.mubr.f32.mxu0 %v4717_v10 }
 0x64f   : > { %v1519_v8 = vpop.trf.xlu0 }
 0x650   : > { %2493 = vmatmul.mubr.msk.f32.gmra.mrb[16].mxu0 %vm1564_vm1, %v1519_v8  ;;  %v1551_v19 = vpop.trf.xlu1 }
 0x651   : > { %1749 = vmatprep.mubr.f32.mxu0 %v4717_v10 }
 0x653   : > { %v1520_v5 = vpop.trf.xlu0 }
 0x654   : > { %2494 = vmatmul.mubr.msk.f32.gmra.mrb[18].mxu0 %vm1564_vm1, %v1520_v5  ;;  %v1552_v46 = vpop.trf.xlu1 }
 0x655   : > { %1755 = vmatprep.mubr.f32.mxu0 %v4717_v10 }
 0x657   : > { %v1521_v47 = vpop.trf.xlu0 }
 0x658   : > { %2495 = vmatmul.mubr.msk.f32.gmra.mrb[20].mxu0 %vm1564_vm1, %v1521_v47  ;;  %v1553_v9 = vpop.trf.xlu1 }
 0x659   : > { %1761 = vmatprep.mubr.f32.mxu0 %v4717_v10 }
 0x65b   : > { %v1522_v6 = vpop.trf.xlu0 }
 0x65c   : > { %2496 = vmatmul.mubr.msk.f32.gmra.mrb[22].mxu0 %vm1564_vm1, %v1522_v6  ;;  %v1554_v25 = vpop.trf.xlu1 }
 0x65d   : > { %1767 = vmatprep.mubr.f32.mxu0 %v4717_v10 }
 0x65f   : > { %v1523_v12 = vpop.trf.xlu0 }
 0x660   : > { %2497 = vmatmul.mubr.msk.f32.gmra.mrb[24].mxu0 %vm1564_vm1, %v1523_v12  ;;  %v1555_v29 = vpop.trf.xlu1 }
 0x661   : > { %1773 = vmatprep.mubr.f32.mxu0 %v4717_v10 }
 0x663   : > { %v1524_v51 = vpop.trf.xlu0 }
 0x664   : > { %2498 = vmatmul.mubr.msk.f32.gmra.mrb[26].mxu0 %vm1564_vm1, %v1524_v51  ;;  %v1556_v48 = vpop.trf.xlu1 }
 0x665   : > { %1779 = vmatprep.mubr.f32.mxu0 %v4717_v10 }
 0x667   : > { %v1525_v2 = vpop.trf.xlu0 }
 0x668   : > { %2499 = vmatmul.mubr.msk.f32.gmra.mrb[28].mxu0 %vm1564_vm1, %v1525_v2  ;;  %v1557_v22 = vpop.trf.xlu1 }
 0x669   : > { %1785 = vmatprep.mubr.f32.mxu0 %v4717_v10 }
 0x66b   : > { %v1526_v60 = vpop.trf.xlu0 }
 0x66c   : > { %2500 = vmatmul.mubr.msk.f32.gmra.mrb[30].mxu0 %vm1564_vm1, %v1526_v60  ;;  %v1558_v54 = vpop.trf.xlu1 }
 0x66d   : > { %1791 = vmatprep.mubr.f32.mxu0 %v4717_v10 }
 0x66f   : > { %v1527_v41 = vpop.trf.xlu0 }
 0x670   : > { %2501 = vmatmul.mubr.msk.f32.gmra.mrb[32].mxu0 %vm1564_vm1, %v1527_v41  ;;  %v1559_v37 = vpop.trf.xlu1 }
 0x671   : > { %1797 = vmatprep.mubr.f32.mxu0 %v4717_v10 }
 0x673   : > { %v1528_v20 = vpop.trf.xlu0 }
 0x674   : > { %2502 = vmatmul.mubr.msk.f32.gmra.mrb[34].mxu0 %vm1564_vm1, %v1528_v20  ;;  %v1560_v11 = vpop.trf.xlu1 }
 0x675   : > { %1803 = vmatprep.mubr.f32.mxu0 %v4717_v10 }
 0x677   : > { %v1529_v23 = vpop.trf.xlu0 }
 0x678   : > { %2503 = vmatmul.mubr.msk.f32.gmra.mrb[36].mxu0 %vm1564_vm1, %v1529_v23  ;;  %v1561_v42 = vpop.trf.xlu1 }
 0x679   : > { %1809 = vmatprep.mubr.f32.mxu0 %v4717_v10 }
 0x67b   : > { %v1530_v17 = vpop.trf.xlu0 }
 0x67c   : > { %2504 = vmatmul.mubr.msk.f32.gmra.mrb[38].mxu0 %vm1564_vm1, %v1530_v17  ;;  %v1562_v52 = vpop.trf.xlu1 }
 0x67d   : > { %1815 = vmatprep.mubr.f32.mxu0 %v4717_v10 }
 0x67f   : > { %v1531_v27 = vpop.trf.xlu0 }
 0x680   : > { %2505 = vmatmul.mubr.msk.f32.gmra.mrb[40].mxu0 %vm1564_vm1, %v1531_v27  ;;  %v1563_v3 = vpop.trf.xlu1 }
 0x681   : > { %1821 = vmatprep.mubr.f32.mxu0 %v4717_v10 }
 0x684   : > { %2506 = vmatmul.mubr.msk.f32.gmra.mrb[42].mxu0 %vm1564_vm1, %v1548_v44 }
 0x685   : > { %1827 = vmatprep.mubr.f32.mxu0 %v4717_v10 }
 0x688   : > { %2507 = vmatmul.mubr.msk.f32.gmra.mrb[44].mxu0 %vm1564_vm1, %v1549_v55 }
 0x689   : > { %1833 = vmatprep.mubr.f32.mxu0 %v4717_v10 }
 0x68c   : > { %2508 = vmatmul.mubr.msk.f32.gmra.mrb[46].mxu0 %vm1564_vm1, %v1550_v63 }
 0x68d   : > { %1839 = vmatprep.mubr.f32.mxu0 %v4717_v10 }
 0x690   : > { %2509 = vmatmul.mubr.msk.f32.gmra.mrb[48].mxu0 %vm1564_vm1, %v1551_v19 }
 0x691   : > { %1845 = vmatprep.mubr.f32.mxu0 %v4717_v10 }
 0x694   : > { %2510 = vmatmul.mubr.msk.f32.gmra.mrb[50].mxu0 %vm1564_vm1, %v1552_v46 }
 0x695   : > { %1851 = vmatprep.mubr.f32.mxu0 %v4717_v10 }
 0x698   : > { %2511 = vmatmul.mubr.msk.f32.gmra.mrb[52].mxu0 %vm1564_vm1, %v1553_v9 }
 0x699   : > { %1857 = vmatprep.mubr.f32.mxu0 %v4717_v10 }
 0x69c   : > { %2512 = vmatmul.mubr.msk.f32.gmra.mrb[54].mxu0 %vm1564_vm1, %v1554_v25 }
 0x69d   : > { %1863 = vmatprep.mubr.f32.mxu0 %v4717_v10 }
 0x6a0   : > { %2513 = vmatmul.mubr.msk.f32.gmra.mrb[56].mxu0 %vm1564_vm1, %v1555_v29 }
 0x6a1   : > { %1869 = vmatprep.mubr.f32.mxu0 %v4717_v10 }
 0x6a4   : > { %2514 = vmatmul.mubr.msk.f32.gmra.mrb[58].mxu0 %vm1564_vm1, %v1556_v48 }
 0x6a5   : > { %1875 = vmatprep.mubr.f32.mxu0 %v4717_v10 }
 0x6a7   : > { %v1347_v26 = vpop.permute.xlu0 %1346 }
 0x6a8   : > { %v3883_v30 = vadd.f32 %v3817_v59, %v1347_v26  ;;  %2515 = vmatmul.mubr.msk.f32.gmra.mrb[60].mxu0 %vm1564_vm1, %v1557_v22  ;;  %v1465_v7 = vadd.f32 %v3822_v16, %v1347_v26 }
 0x6a9   : > { %1881 = vmatprep.mubr.f32.mxu0 %v4717_v10 }
 0x6aa   : > { %4720 = vst [vmem:[#allocation10_spill] sm:$0xff] %v3883_v30 }
 0x6ac   : > { %2516 = vmatmul.mubr.msk.f32.gmra.mrb[62].mxu0 %vm1564_vm1, %v1558_v54 }
 0x6ad   : > { %1887 = vmatprep.mubr.f32.mxu0 %v4717_v10 }
 0x6b0   : > { %2517 = vmatmul.mubr.msk.f32.gmra.mrb[64].mxu0 %vm1564_vm1, %v1559_v37 }
 0x6b1   : > { %1893 = vmatprep.mubr.f32.mxu0 %v4717_v10 }
 0x6b4   : > { %2518 = vmatmul.mubr.msk.f32.gmra.mrb[66].mxu0 %vm1564_vm1, %v1560_v11 }
 0x6b5   : > { %1899 = vmatprep.mubr.f32.mxu0 %v4717_v10 }
 0x6b8   : > { %2519 = vmatmul.mubr.msk.f32.gmra.mrb[68].mxu0 %vm1564_vm1, %v1561_v42 }
 0x6b9   : > { %1905 = vmatprep.mubr.f32.mxu0 %v4717_v10 }
 0x6bc   : > { %2520 = vmatmul.mubr.msk.f32.gmra.mrb[70].mxu0 %vm1564_vm1, %v1562_v52 }
 0x6bd   : > { %1911 = vmatprep.mubr.f32.mxu0 %v4717_v10 }
 0x6c0   : > { %2521 = vmatmul.mubr.msk.f32.gmra.mrb[72].mxu0 %vm1564_vm1, %v1563_v3 }
 0x6c1   : > { %2248 = vmatprep.mubr.f32.mxu0 %v1465_v7 }
 0x717   : > { %v3902_v34 = vpop.f32.mrb[10].mxu0 }
 0x718   : > { %v3904_v45 = vpop.f32.mrb[11].mxu0 }
 0x71b   : > { %v3906_v0 = vpop.f32.mrb[12].mxu0 }
 0x71c   : > { %v3908_v62 = vpop.f32.mrb[13].mxu0 }
 0x71f   : > { %v3910_v24 = vpop.f32.mrb[14].mxu0 }
 0x720   : > { %v1918_v36 = vmax.f32 %v3902_v34, %v3910_v24  ;;  %v3914_v35 = vpop.f32.mrb[15].mxu0 }
 0x721   : > { %v1955_v49 = vmax.f32 %v3904_v45, %v3914_v35 }
 0x723   : > { %v3918_v15 = vpop.f32.mrb[16].mxu0 }
 0x724   : > { %v1919_v53 = vmax.f32 %v3906_v0, %v3918_v15  ;;  %v3922_v40 = vpop.f32.mrb[17].mxu0 }
 0x725   : > { %v1956_v56 = vmax.f32 %v3908_v62, %v3922_v40 }
 0x727   : > { %v3926_v14 = vpop.f32.mrb[18].mxu0 }
 0x728   : > { %v1920_v32 = vmax.f32 %v1918_v36, %v3926_v14  ;;  %v3929_v28 = vpop.f32.mrb[19].mxu0 }
 0x729   : > { %v1957_v57 = vmax.f32 %v1955_v49, %v3929_v28 }
 0x72b   : > { %v3932_v39 = vpop.f32.mrb[20].mxu0 }
 0x72c   : > { %v1921_v33 = vmax.f32 %v1919_v53, %v3932_v39  ;;  %v3935_v18 = vpop.f32.mrb[21].mxu0 }
 0x72d   : > { %v1958_v13 = vmax.f32 %v1956_v56, %v3935_v18 }
 0x72f   : > { %v3938_v1 = vpop.f32.mrb[22].mxu0 }
 0x730   : > { %v1922_v59 = vmax.f32 %v1920_v32, %v3938_v1  ;;  %v3941_v31 = vpop.f32.mrb[23].mxu0 }
 0x731   : > { %v1959_v16 = vmax.f32 %v1957_v57, %v3941_v31 }
 0x733   : > { %v3944_v43 = vpop.f32.mrb[24].mxu0 }
 0x734   : > { %v1923_v4 = vmax.f32 %v1921_v33, %v3944_v43  ;;  %v3947_v58 = vpop.f32.mrb[25].mxu0 }
 0x735   : > { %v1960_v61 = vmax.f32 %v1958_v13, %v3947_v58 }
 0x737   : > { %v3950_v8 = vpop.f32.mrb[26].mxu0 }
 0x738   : > { %v1924_v5 = vmax.f32 %v1922_v59, %v3950_v8  ;;  %v3953_v47 = vpop.f32.mrb[27].mxu0 }
 0x739   : > { %v1961_v6 = vmax.f32 %v1959_v16, %v3953_v47 }
 0x73b   : > { %v3956_v12 = vpop.f32.mrb[28].mxu0 }
 0x73c   : > { %v1925_v51 = vmax.f32 %v1923_v4, %v3956_v12  ;;  %v3959_v44 = vpop.f32.mrb[29].mxu0 }
 0x73d   : > { %v1962_v2 = vmax.f32 %v1960_v61, %v3959_v44 }
 0x73f   : > { %v3962_v55 = vpop.f32.mrb[30].mxu0 }
 0x740   : > { %v1926_v60 = vmax.f32 %v1924_v5, %v3962_v55  ;;  %v3965_v41 = vpop.f32.mrb[31].mxu0 }
 0x741   : > { %4721 = vst [vmem:[#allocation11_spill] sm:$0xff] %v3965_v41  ;;  %v1963_v63 = vmax.f32 %v1961_v6, %v3965_v41 }
 0x743   : > { %v3968_v20 = vpop.f32.mrb[32].mxu0 }
 0x744   : > { %v1927_v19 = vmax.f32 %v1925_v51, %v3968_v20  ;;  %v3971_v23 = vpop.f32.mrb[33].mxu0 }
 0x745   : > { %4722 = vst [vmem:[#allocation12_spill] sm:$0xff] %v3971_v23  ;;  %v1964_v17 = vmax.f32 %v1962_v2, %v3971_v23 }
 0x747   : > { %v3974_v46 = vpop.f32.mrb[34].mxu0 }
 0x748   : > { %v1928_v27 = vmax.f32 %v1926_v60, %v3974_v46  ;;  %v3977_v9 = vpop.f32.mrb[35].mxu0 }
 0x749   : > { %4723 = vst [vmem:[#allocation13_spill] sm:$0xff] %v3977_v9  ;;  %v1965_v25 = vmax.f32 %v1963_v63, %v3977_v9 }
 0x74b   : > { %v3980_v29 = vpop.f32.mrb[36].mxu0 }
 0x74c   : > { %v1929_v48 = vmax.f32 %v1927_v19, %v3980_v29  ;;  %v3983_v22 = vpop.f32.mrb[37].mxu0 }
 0x74d   : > { %4724 = vst [vmem:[#allocation14_spill] sm:$0xff] %v3983_v22  ;;  %v1966_v54 = vmax.f32 %v1964_v17, %v3983_v22 }
 0x74f   : > { %v3986_v21 = vpop.f32.mrb[38].mxu0 }
 0x750   : > { %v1930_v37 = vmax.f32 %v1928_v27, %v3986_v21  ;;  %v3989_v26 = vpop.f32.mrb[39].mxu0 }
 0x751   : > { %4725 = vst [vmem:[#allocation15_spill] sm:$0xff] %v3989_v26  ;;  %v1967_v11 = vmax.f32 %v1965_v25, %v3989_v26 }
 0x753   : > { %v3992_v42 = vpop.f32.mrb[40].mxu0 }
 0x754   : > { %v1931_v52 = vmax.f32 %v1929_v48, %v3992_v42  ;;  %v3995_v3 = vpop.f32.mrb[41].mxu0 }
 0x755   : > { %4726 = vst [vmem:[#allocation16_spill] sm:$0xff] %v3995_v3  ;;  %v1968_v7 = vmax.f32 %v1966_v54, %v3995_v3 }
 0x757   : > { %v3998_v50 = vpop.f32.mrb[42].mxu0 }
 0x758   : > { %v1932_v36 = vmax.f32 %v1930_v37, %v3998_v50  ;;  %v4001_v49 = vpop.f32.mrb[43].mxu0 }
 0x759   : > { %4727 = vst [vmem:[#allocation17_spill] sm:$0xff] %v4001_v49  ;;  %v1969_v53 = vmax.f32 %v1967_v11, %v4001_v49 }
 0x75b   : > { %v4004_v56 = vpop.f32.mrb[44].mxu0 }
 0x75c   : > { %v1933_v32 = vmax.f32 %v1931_v52, %v4004_v56  ;;  %v4007_v57 = vpop.f32.mrb[45].mxu0 }
 0x75d   : > { %4728 = vst [vmem:[#allocation18_spill] sm:$0xff] %v4007_v57  ;;  %v1970_v33 = vmax.f32 %v1968_v7, %v4007_v57 }
 0x75f   : > { %v4010_v13 = vpop.f32.mrb[46].mxu0 }
 0x760   : > { %v1934_v59 = vmax.f32 %v1932_v36, %v4010_v13  ;;  %v4013_v16 = vpop.f32.mrb[47].mxu0 }
 0x761   : > { %4729 = vst [vmem:[#allocation19_spill] sm:$0xff] %v4013_v16  ;;  %v1971_v4 = vmax.f32 %v1969_v53, %v4013_v16 }
 0x763   : > { %v4016_v61 = vpop.f32.mrb[48].mxu0 }
 0x764   : > { %v1935_v5 = vmax.f32 %v1933_v32, %v4016_v61  ;;  %v4019_v6 = vpop.f32.mrb[49].mxu0 }
 0x765   : > { %4730 = vst [vmem:[#allocation20_spill] sm:$0xff] %v4019_v6  ;;  %v1972_v51 = vmax.f32 %v1970_v33, %v4019_v6 }
 0x767   : > { %v4022_v2 = vpop.f32.mrb[50].mxu0 }
 0x768   : > { %v1936_v60 = vmax.f32 %v1934_v59, %v4022_v2  ;;  %v4025_v63 = vpop.f32.mrb[51].mxu0 }
 0x769   : > { %4731 = vst [vmem:[#allocation23_spill] sm:$0xff] %v4025_v63  ;;  %v1973_v19 = vmax.f32 %v1971_v4, %v4025_v63 }
 0x76b   : > { %v4028_v17 = vpop.f32.mrb[52].mxu0 }
 0x76c   : > { %v1937_v27 = vmax.f32 %v1935_v5, %v4028_v17  ;;  %v4031_v25 = vpop.f32.mrb[53].mxu0 }
 0x76d   : > { %4732 = vst [vmem:[#allocation25_spill] sm:$0xff] %v4031_v25  ;;  %v1974_v48 = vmax.f32 %v1972_v51, %v4031_v25  ;;  %v4081_v25 = vpop.f32.mrb[74].mxu1 }
 0x76e   : > { %4748 = vst [vmem:[#allocation7_spill] sm:$0xff] %v4081_v25  ;;  %v4084_v63 = vpop.f32.mrb[75].mxu1 }
 0x76f   : > { %v4034_v54 = vpop.f32.mrb[54].mxu0  ;;  %4749 = vst [vmem:[#allocation37_spill] sm:$0xff] %v4084_v63 }
 0x770   : > { %v1938_v37 = vmax.f32 %v1936_v60, %v4034_v54  ;;  %v4037_v11 = vpop.f32.mrb[55].mxu0 }
 0x771   : > { %4733 = vst [vmem:[#allocation27_spill] sm:$0xff] %v4037_v11  ;;  %v1975_v52 = vmax.f32 %v1973_v19, %v4037_v11 }
 0x773   : > { %v4040_v7 = vpop.f32.mrb[56].mxu0 }
 0x774   : > { %4734 = vst [vmem:[#allocation33_spill] sm:$0xff] %v4040_v7  ;;  %v1939_v36 = vmax.f32 %v1937_v27, %v4040_v7  ;;  %v4043_v53 = vpop.f32.mrb[57].mxu0 }
 0x775   : > { %4735 = vst [vmem:[#allocation35_spill] sm:$0xff] %v4043_v53  ;;  %v1976_v32 = vmax.f32 %v1974_v48, %v4043_v53 }
 0x777   : > { %v4046_v33 = vpop.f32.mrb[58].mxu0 }
 0x778   : > { %4736 = vst [vmem:[#allocation21_spill] sm:$0xff] %v4046_v33  ;;  %v1940_v59 = vmax.f32 %v1938_v37, %v4046_v33  ;;  %v4049_v4 = vpop.f32.mrb[59].mxu0 }
 0x779   : > { %4737 = vst [vmem:[#allocation22_spill] sm:$0xff] %v4049_v4  ;;  %v1977_v5 = vmax.f32 %v1975_v52, %v4049_v4 }
 0x77b   : > { %v4052_v51 = vpop.f32.mrb[60].mxu0 }
 0x77c   : > { %4738 = vst [vmem:[#allocation24_spill] sm:$0xff] %v4052_v51  ;;  %v1941_v60 = vmax.f32 %v1939_v36, %v4052_v51  ;;  %v4055_v19 = vpop.f32.mrb[61].mxu0 }
 0x77d   : > { %4739 = vst [vmem:[#allocation26_spill] sm:$0xff] %v4055_v19  ;;  %v1978_v27 = vmax.f32 %v1976_v32, %v4055_v19 }
 0x77f   : > { %v4058_v38 = vpop.f32.mrb[62].mxu0 }
 0x780   : > { %4740 = vst [vmem:[#allocation28_spill] sm:$0xff] %v4058_v38  ;;  %v1942_v48 = vmax.f32 %v1940_v59, %v4058_v38  ;;  %v4061_v10 = vpop.f32.mrb[63].mxu0 }
 0x781   : > { %4741 = vst [vmem:[#allocation29_spill] sm:$0xff] %v4061_v10  ;;  %v1979_v37 = vmax.f32 %v1977_v5, %v4061_v10 }
 0x783   : > { %v4064_v30 = vpop.f32.mrb[64].mxu0 }
 0x784   : > { %4742 = vst [vmem:[#allocation30_spill] sm:$0xff] %v4064_v30  ;;  %v1943_v52 = vmax.f32 %v1941_v60, %v4064_v30  ;;  %v4067_v4 = vpop.f32.mrb[65].mxu0 }
 0x785   : > { %4743 = vst [vmem:[#allocation31_spill] sm:$0xff] %v4067_v4  ;;  %v1980_v36 = vmax.f32 %v1978_v27, %v4067_v4 }
 0x787   : > { %v4070_v53 = vpop.f32.mrb[66].mxu0 }
 0x788   : > { %4744 = vst [vmem:[#allocation32_spill] sm:$0xff] %v4070_v53  ;;  %v1944_v32 = vmax.f32 %v1942_v48, %v4070_v53  ;;  %v4073_v19 = vpop.f32.mrb[67].mxu0 }
 0x789   : > { %4745 = vst [vmem:[#allocation34_spill] sm:$0xff] %v4073_v19  ;;  %v1981_v59 = vmax.f32 %v1979_v37, %v4073_v19 }
 0x78b   : > { %v4076_v11 = vpop.f32.mrb[68].mxu0 }
 0x78c   : > { %4746 = vst [vmem:[#allocation36_spill] sm:$0xff] %v4076_v11  ;;  %v1945_v5 = vmax.f32 %v1943_v52, %v4076_v11  ;;  %v4079_v10 = vpop.f32.mrb[69].mxu0 }
 0x78d   : > { %4747 = vst [vmem:[#allocation8_spill] sm:$0xff] %v4079_v10  ;;  %v1982_v60 = vmax.f32 %v1980_v36, %v4079_v10 }
 0x78f   : > { %v4086_v27 = vpop.f32.mrb[70].mxu0 }
 0x790   : > { %4750 = vst [vmem:[#allocation38_spill] sm:$0xff] %v4086_v27  ;;  %v1946_v48 = vmax.f32 %v1944_v32, %v4086_v27  ;;  %v4089_v4 = vpop.f32.mrb[71].mxu0  ;;  %v4769_v27 = vld [vmem:[#allocation34_spill] sm:$0xff] }
 0x791   : > { %v1983_v37 = vmax.f32 %v1981_v59, %v4089_v4 }
 0x793   : > { %v1913_v19 = vpop.f32.mrb[72].mxu0 }
 0x794   : > { %v1947_v6 = vmax.f32 %v1945_v5, %v1913_v19  ;;  %v1915_v16 = vpop.f32.mrb[73].mxu0  ;;  %v4770_v11 = vld [vmem:[#allocation8_spill] sm:$0xff] }
 0x795   : > { %v1984_v52 = vmax.f32 %v1982_v60, %v1915_v16 }
 0x796   : > { %v1948_v57 = vmax.f32 %v1946_v48, %v1947_v6 }
 0x797   : > { %v1985_v49 = vmax.f32 %v1983_v37, %v1984_v52 }
 0x798   : > { %v1949_v3 = vrot.slane %v1948_v57, 4 }
 0x799   : > { %v1986_v25 = vrot.slane %v1985_v49, 4 }
 0x79a   : > { %v1950_v26 = vmax.f32 %v1948_v57, %v1949_v3  ;;  %v4765_v3 = vld [vmem:[#allocation22_spill] sm:$0xff] }
 0x79b   : > { %v1987_v36 = vmax.f32 %v1985_v49, %v1986_v25  ;;  %v4758_v25 = vld [vmem:[#allocation18_spill] sm:$0xff]  ;;  %v4764_v49 = vld [vmem:[#allocation35_spill] sm:$0xff] }
 0x79c   : > { %v1951_v10 = vrot.slane %v1950_v26, 2 }
 0x79d   : > { %v1988_v63 = vrot.slane %v1987_v36, 2 }
 0x79e   : > { %v1952_v22 = vmax.f32 %v1950_v26, %v1951_v10  ;;  %v4760_v26 = vld [vmem:[#allocation20_spill] sm:$0xff] }
 0x79f   : > { %v1989_v9 = vmax.f32 %v1987_v36, %v1988_v63 }
 0x7a0   : > { %v1953_v23 = vrot.slane %v1952_v22, 1 }
 0x7a1   : > { %v1990_v41 = vrot.slane %v1989_v9, 1 }
 0x7a2   : > { %v4092_v32 = vmax.f32 %v1952_v22, %v1953_v23  ;;  %v4761_v22 = vld [vmem:[#allocation23_spill] sm:$0xff]  ;;  %v4762_v23 = vld [vmem:[#allocation25_spill] sm:$0xff] }
 0x7a3   : > { %v4129_v63 = vmax.f32 %v1989_v9, %v1990_v41 }
 0x7a4   : > { %v2054_v59 = vsub.f32 %v1913_v19, %v4092_v32  ;;  %v4771_v30 = vsub.f32 %v3902_v34, %v4092_v32  ;;  %v4772_v51 = vsub.f32 %v3906_v0, %v4092_v32  ;;  %v4773_v33 = vsub.f32 %v3910_v24, %v4092_v32 }
 0x7a5   : > { %v2055_v9 = vsub.f32 %v1915_v16, %v4129_v63  ;;  %v1993_v60 = vsub.f32 %v3904_v45, %v4129_v63  ;;  %v1995_v48 = vsub.f32 %v3908_v62, %v4129_v63  ;;  %v1997_v37 = vsub.f32 %v3914_v35, %v4129_v63  ;;  %v4755_v45 = vld [vmem:[#allocation15_spill] sm:$0xff]  ;;  %v4756_v62 = vld [vmem:[#allocation16_spill] sm:$0xff]  ;;  %v4757_v35 = vld [vmem:[#allocation17_spill] sm:$0xff] }
 0x7a6   : > { %v1999_v52 = vsub.f32 %v3922_v40, %v4129_v63  ;;  %v2001_v36 = vsub.f32 %v3929_v28, %v4129_v63  ;;  %v2180_v19 = vmul.f32 1.442695, %v2054_v59  ;;  %v2003_v41 = vsub.f32 %v3935_v18, %v4129_v63  ;;  %v4751_v40 = vld [vmem:[#allocation11_spill] sm:$0xff]  ;;  %v4752_v28 = vld [vmem:[#allocation12_spill] sm:$0xff]  ;;  %v4753_v18 = vld [vmem:[#allocation13_spill] sm:$0xff] }
 0x7a7   : > { %v2005_v16 = vsub.f32 %v3941_v31, %v4129_v63  ;;  %v2182_v57 = vmul.f32 1.442695, %v2055_v9  ;;  %v4754_v31 = vld [vmem:[#allocation14_spill] sm:$0xff]  ;;  %v4759_v9 = vld [vmem:[#allocation19_spill] sm:$0xff]  ;;  %v2056_v38 = vmul.f32 1.442695, %v4771_v30  ;;  %v4774_v10 = vsub.f32 %v3918_v15, %v4092_v32 }
 0x7a8   : > { %v4766_v59 = vld [vmem:[#allocation26_spill] sm:$0xff]  ;;  %2844 = vpow2.f32 %v2180_v19  ;;  %v2060_v6 = vmul.f32 1.442695, %v4772_v51  ;;  %v2064_v5 = vmul.f32 1.442695, %v4773_v33  ;;  %v4775_v19 = vsub.f32 %v3926_v14, %v4092_v32 }
 0x7a9   : > { %2846 = vpow2.f32 %v2182_v57  ;;  %v2068_v7 = vmul.f32 1.442695, %v4774_v10  ;;  %v4776_v30 = vsub.f32 %v3932_v39, %v4092_v32  ;;  %v4777_v0 = vsub.f32 %v3938_v1, %v4092_v32 }
 0x7aa   : > { %v2072_v53 = vmul.f32 1.442695, %v4775_v19  ;;  %2848 = vpow2.f32 %v2056_v38  ;;  %v4778_v33 = vsub.f32 %v3944_v43, %v4092_v32  ;;  %v4779_v14 = vsub.f32 %v3950_v8, %v4092_v32 }
 0x7ab   : > { %v2076_v34 = vmul.f32 1.442695, %v4776_v30  ;;  %2850 = vpow2.f32 %v2060_v6  ;;  %v2080_v24 = vmul.f32 1.442695, %v4777_v0  ;;  %v4780_v38 = vsub.f32 %v3956_v12, %v4092_v32 }
 0x7ac   : > { %2852 = vpow2.f32 %v2064_v5  ;;  %v2084_v15 = vmul.f32 1.442695, %v4778_v33  ;;  %v2088_v51 = vmul.f32 1.442695, %v4779_v14  ;;  %v2058_v5 = vmul.f32 1.442695, %v1993_v60 }
 0x7ad   : > { %2854 = vpow2.f32 %v2068_v7  ;;  %v2092_v39 = vmul.f32 1.442695, %v4780_v38  ;;  %v2062_v6 = vmul.f32 1.442695, %v1995_v48  ;;  %v2066_v7 = vmul.f32 1.442695, %v1997_v37 }
 0x7ae   : > { %2856 = vpow2.f32 %v2072_v53  ;;  %v2070_v10 = vmul.f32 1.442695, %v1999_v52  ;;  %v2074_v53 = vmul.f32 1.442695, %v2001_v36  ;;  %v2078_v12 = vmul.f32 1.442695, %v2003_v41 }
 0x7af   : > { %2858 = vpow2.f32 %v2076_v34  ;;  %v2082_v30 = vmul.f32 1.442695, %v2005_v16  ;;  %v4781_v60 = vsub.f32 %v3947_v58, %v4129_v63  ;;  %v4782_v52 = vsub.f32 %v3953_v47, %v4129_v63 }
 0x7b0   : > { %2860 = vpow2.f32 %v2080_v24  ;;  %v4783_v41 = vsub.f32 %v3959_v44, %v4129_v63  ;;  %v4784_v58 = vsub.f32 %v3962_v55, %v4092_v32  ;;  %v4785_v47 = vsub.f32 %v4751_v40, %v4129_v63 }
 0x7b1   : > { %2862 = vpow2.f32 %v2084_v15  ;;  %v2086_v48 = vmul.f32 1.442695, %v4781_v60  ;;  %v2090_v36 = vmul.f32 1.442695, %v4782_v52  ;;  %v4786_v44 = vsub.f32 %v3968_v20, %v4092_v32 }
 0x7b2   : > { %v4252_v1 = vpop.eup %2844  ;;  %2864 = vpow2.f32 %v2088_v51  ;;  %v2094_v16 = vmul.f32 1.442695, %v4783_v41  ;;  %v2096_v33 = vmul.f32 1.442695, %v4784_v58  ;;  %v2098_v14 = vmul.f32 1.442695, %v4785_v47 }
 0x7b3   : > { %v4254_v43 = vpop.eup %2846  ;;  %2866 = vpow2.f32 %v2092_v39  ;;  %v2100_v38 = vmul.f32 1.442695, %v4786_v44  ;;  %v4787_v39 = vsub.f32 %v4752_v28, %v4129_v63  ;;  %v4795_v44 = vsub.f32 %v4756_v62, %v4129_v63 }
 0x7b4   : > { %v2849_v8 = vpop.eup %2848  ;;  %2868 = vpow2.f32 %v2058_v5 }
 0x7b5   : > { %v2851_v57 = vpop.eup %2850  ;;  %2870 = vpow2.f32 %v2062_v6  ;;  %v2102_v55 = vmul.f32 1.442695, %v4787_v39 }
 0x7b6   : > { %v4256_v19 = vpop.eup %2852  ;;  %2872 = vpow2.f32 %v2066_v7  ;;  %v2601_v5 = vpack.c.bf16 %v2851_v57, %v2849_v8  ;;  %v4789_v57 = vsub.f32 %v4753_v18, %v4129_v63 }
 0x7b7   : > { %v4258_v34 = vpop.eup %2854  ;;  %2874 = vpow2.f32 %v2070_v10 }
 0x7b8   : > { %v4263_v37 = vpop.eup %2856  ;;  %2876 = vpow2.f32 %v2074_v53  ;;  %v2605_v7 = vpack.c.bf16 %v4258_v34, %v4256_v19  ;;  %v4788_v53 = vsub.f32 %v3974_v46, %v4092_v32  ;;  %v2106_v19 = vmul.f32 1.442695, %v4789_v57 }
 0x7b9   : > { %v4268_v0 = vpop.eup %2858  ;;  %2878 = vpow2.f32 %v2078_v12  ;;  %v4790_v34 = vsub.f32 %v3980_v29, %v4092_v32  ;;  %v4791_v46 = vsub.f32 %v4754_v31, %v4129_v63  ;;  %v4793_v29 = vsub.f32 %v4755_v45, %v4129_v63 }
 0x7ba   : > { %v4273_v24 = vpop.eup %2860  ;;  %2880 = vpow2.f32 %v2082_v30  ;;  %v2609_v40 = vpack.c.bf16 %v4268_v0, %v4263_v37  ;;  %v2104_v12 = vmul.f32 1.442695, %v4788_v53  ;;  %v4792_v0 = vsub.f32 %v3986_v21, %v4092_v32 }
 0x7bb   : > { %v4278_v15 = vpop.eup %2862  ;;  %2882 = vpow2.f32 %v2086_v48  ;;  %v2108_v60 = vmul.f32 1.442695, %v4790_v34  ;;  %v2110_v52 = vmul.f32 1.442695, %v4791_v46  ;;  %v2114_v58 = vmul.f32 1.442695, %v4793_v29 }
 0x7bc   : > { %v4283_v51 = vpop.eup %2864  ;;  %2884 = vpow2.f32 %v2090_v36  ;;  %v2613_v10 = vpack.c.bf16 %v4278_v15, %v4273_v24  ;;  %v2112_v41 = vmul.f32 1.442695, %v4792_v0  ;;  %v4794_v31 = vsub.f32 %v3992_v42, %v4092_v32 }
 0x7bd   : > { %v4291_v6 = vpop.eup %2866  ;;  %2886 = vpow2.f32 %v2094_v16  ;;  %v4796_v45 = vsub.f32 %v3998_v50, %v4092_v32  ;;  %v4797_v42 = vsub.f32 %v4757_v35, %v4129_v63  ;;  %v4799_v50 = vsub.f32 %v4758_v25, %v4129_v63 }
 0x7be   : > { %v2869_v20 = vpop.eup %2868  ;;  %2888 = vpow2.f32 %v2096_v33  ;;  %v2617_v28 = vpack.c.bf16 %v4291_v6, %v4283_v51  ;;  %v2116_v47 = vmul.f32 1.442695, %v4794_v31  ;;  %v4800_v35 = vsub.f32 %v4010_v13, %v4092_v32 }
 0x7bf   : > { %v2871_v8 = vpop.eup %2870  ;;  %2890 = vpow2.f32 %v2098_v14  ;;  %v2122_v53 = vmul.f32 1.442695, %v4797_v42  ;;  %v4803_v13 = vsub.f32 %v4760_v26, %v4129_v63  ;;  %v4806_v26 = vsub.f32 %v4028_v17, %v4092_v32 }
 0x7c0   : > { %v2873_v30 = vpop.eup %2872  ;;  %2892 = vpow2.f32 %v2100_v38  ;;  %v2599_v48 = vpack.c.bf16 %v2871_v8, %v2869_v20  ;;  %v2118_v38 = vmul.f32 1.442695, %v4795_v44  ;;  %v4798_v8 = vsub.f32 %v4004_v56, %v4092_v32  ;;  %v4809_v44 = vld [vmem:[#allocation27_spill] sm:$0xff] }
 0x7c1   : > { %v2875_v37 = vpop.eup %2874  ;;  %2894 = vpow2.f32 %v2102_v55  ;;  %v2120_v55 = vmul.f32 1.442695, %v4796_v45  ;;  %v4801_v56 = vsub.f32 %v4759_v9, %v4129_v63  ;;  %v4804_v9 = vsub.f32 %v4022_v2, %v4092_v32 }
 0x7c2   : > { %v2877_v36 = vpop.eup %2876  ;;  %2896 = vpow2.f32 %v2104_v12  ;;  %2600 = vmatprep.subr.bf16.mxu0 %v2599_v48  ;;  %v2603_v18 = vpack.c.bf16 %v2875_v37, %v2873_v30  ;;  %v2124_v62 = vmul.f32 1.442695, %v4798_v8  ;;  %v2126_v30 = vmul.f32 1.442695, %v4799_v50  ;;  %v4814_v8 = vld [vmem:[#allocation21_spill] sm:$0xff] }
 0x7c3   : > { %v2879_v16 = vpop.eup %2878  ;;  %2898 = vpow2.f32 %v2106_v19  ;;  %2602 = vmatpush1.bf16.msra.mxu0 %v2601_v5  ;;  %v2130_v48 = vmul.f32 1.442695, %v4801_v56  ;;  %v2140_v31 = vmul.f32 1.442695, %v4806_v26  ;;  %v4808_v24 = vsub.f32 %v4034_v54, %v4092_v32 }
 0x7c4   : > { %v2881_v33 = vpop.eup %2880  ;;  %2900 = vpow2.f32 %v2108_v60  ;;  %2604 = vmatprep.subr.bf16.mxu0 %v2603_v18  ;;  %v2607_v14 = vpack.c.bf16 %v2879_v16, %v2877_v36  ;;  %v2128_v60 = vmul.f32 1.442695, %v4800_v35  ;;  %v4810_v17 = vsub.f32 %v4809_v44, %v4129_v63 }
 0x7c5   : > { %v2883_v21 = vpop.eup %2882  ;;  %2902 = vpow2.f32 %v2110_v52  ;;  %v4802_v52 = vsub.f32 %v4016_v61, %v4092_v32  ;;  %v4805_v61 = vsub.f32 %v4761_v22, %v4129_v63  ;;  %v2144_v15 = vmul.f32 1.442695, %v4808_v24 }
 0x7c6   : > { %v2885_v39 = vpop.eup %2884  ;;  %2904 = vpow2.f32 %v2112_v41  ;;  %v2611_v5 = vpack.c.bf16 %v2883_v21, %v2881_v33  ;;  %v2134_v41 = vmul.f32 1.442695, %v4803_v13  ;;  %v4813_v42 = vsub.f32 %v4764_v49, %v4129_v63 }
 0x7c7   : > { %v2887_v20 = vpop.eup %2886  ;;  %2906 = vpow2.f32 %v2114_v58  ;;  %2606 = vmatpush1.bf16.msra.mxu0 %v2605_v7  ;;  %v2132_v25 = vmul.f32 1.442695, %v4802_v52  ;;  %v2138_v29 = vmul.f32 1.442695, %v4805_v61  ;;  %v4815_v51 = vsub.f32 %v4814_v8, %v4092_v32  ;;  %v4826_v61 = vld [vmem:[#allocation31_spill] sm:$0xff] }
 0x7c8   : > { %v2889_v12 = vpop.eup %2888  ;;  %2908 = vpow2.f32 %v2116_v47  ;;  %2608 = vmatprep.subr.bf16.mxu0 %v2607_v14  ;;  %v2615_v57 = vpack.c.bf16 %v2887_v20, %v2885_v39  ;;  %v4807_v14 = vsub.f32 %v4762_v23, %v4129_v63  ;;  %v4811_v23 = vld [vmem:[#allocation33_spill] sm:$0xff] }
 0x7c9   : > { %v2891_v19 = vpop.eup %2890  ;;  %2910 = vpow2.f32 %v2118_v38  ;;  %v2146_v38 = vmul.f32 1.442695, %v4810_v17  ;;  %v2152_v6 = vmul.f32 1.442695, %v4815_v51 }
 0x7ca   : > { %v2893_v34 = vpop.eup %2892  ;;  %2912 = vpow2.f32 %v2120_v55  ;;  %v2142_v22 = vmul.f32 1.442695, %v4807_v14  ;;  %v4812_v55 = vsub.f32 %v4811_v23, %v4092_v32  ;;  %v4830_v14 = vsub.f32 %v4769_v27, %v4129_v63 }
 0x7cb   : > { %v2895_v7 = vpop.eup %2894  ;;  %2914 = vpow2.f32 %v2122_v53  ;;  %2610 = vmatpush1.bf16.msra.mxu0 %v2609_v40  ;;  %v2621_v37 = vpack.c.bf16 %v2893_v34, %v2889_v12  ;;  %v2136_v40 = vmul.f32 1.442695, %v4804_v9  ;;  %v2150_v53 = vmul.f32 1.442695, %v4813_v42 }
 0x7cc   : > { %v2897_v46 = vpop.eup %2896  ;;  %2916 = vpow2.f32 %v2124_v62  ;;  %2612 = vmatprep.subr.bf16.mxu0 %v2611_v5  ;;  %v2619_v36 = vpack.c.bf16 %v2895_v7, %v2891_v19  ;;  %v2148_v5 = vmul.f32 1.442695, %v4812_v55  ;;  %v4816_v62 = vsub.f32 %v4765_v3, %v4129_v63 }
 0x7cd   : > { %v2899_v0 = vpop.eup %2898  ;;  %2918 = vpow2.f32 %v2126_v30  ;;  %v4817_v30 = vld [vmem:[#allocation24_spill] sm:$0xff]  ;;  %v4819_v7 = vsub.f32 %v4766_v59, %v4129_v63 }
 0x7ce   : > { %v2901_v18 = vpop.eup %2900  ;;  %2920 = vpow2.f32 %v2128_v60  ;;  %v4818_v34 = vsub.f32 %v4817_v30, %v4092_v32 }
 0x7cf   : > { %v2903_v16 = vpop.eup %2902  ;;  %2922 = vpow2.f32 %v2130_v48  ;;  %2614 = vmatpush1.bf16.msra.mxu0 %v2613_v10  ;;  %v2625_v58 = vpack.c.bf16 %v2901_v18, %v2897_v46  ;;  %v2158_v56 = vmul.f32 1.442695, %v4819_v7  ;;  %v4820_v46 = vld [vmem:[#allocation28_spill] sm:$0xff]  ;;  %v4824_v18 = vld [vmem:[#allocation30_spill] sm:$0xff] }
 0x7d0   : > { %v2905_v33 = vpop.eup %2904  ;;  %2924 = vpow2.f32 %v2132_v25  ;;  %2616 = vmatprep.subr.bf16.mxu0 %v2615_v57  ;;  %v2623_v2 = vpack.c.bf16 %v2903_v16, %v2899_v0  ;;  %v2154_v57 = vmul.f32 1.442695, %v4816_v62  ;;  %v2156_v49 = vmul.f32 1.442695, %v4818_v34  ;;  %v4822_v25 = vld [vmem:[#allocation29_spill] sm:$0xff] }
 0x7d1   : > { %v2907_v47 = vpop.eup %2906  ;;  %2926 = vpow2.f32 %v2134_v41  ;;  %v4821_v3 = vsub.f32 %v4820_v46, %v4092_v32  ;;  %v4825_v9 = vsub.f32 %v4824_v18, %v4092_v32 }
 0x7d2   : > { %v2909_v21 = vpop.eup %2908  ;;  %2928 = vpow2.f32 %v2136_v40 }
 0x7d3   : > { %v2911_v10 = vpop.eup %2910  ;;  %2930 = vpow2.f32 %v2138_v29  ;;  %2618 = vmatpush1.bf16.msra.mxu0 %v2617_v28  ;;  %v2629_v39 = vpack.c.bf16 %v2909_v21, %v2905_v33  ;;  %v2164_v59 = vmul.f32 1.442695, %v4825_v9  ;;  %v4827_v29 = vsub.f32 %v4826_v61, %v4129_v63  ;;  %v1494_v61 = vld [vmem:[%s4492_s7 + $0x8] sm:$0xff] }
 0x7d4   : > { %v2913_v45 = vpop.eup %2912  ;;  %2932 = vpow2.f32 %v2140_v31  ;;  %2620 = vmatprep.subr.bf16.mxu0 %v2619_v36  ;;  %v2627_v54 = vpack.c.bf16 %v2911_v10, %v2907_v47  ;;  %v4823_v36 = vsub.f32 %v4822_v25, %v4129_v63  ;;  %v4828_v31 = vld [vmem:[#allocation32_spill] sm:$0xff] }
 0x7d5   : > { %v2915_v20 = vpop.eup %2914  ;;  %2934 = vpow2.f32 %v2142_v22  ;;  %v2166_v33 = vmul.f32 1.442695, %v4827_v29  ;;  %v2170_v22 = vmul.f32 1.442695, %v4830_v14  ;;  %v4841_v29 = vld [vmem:[#allocation9_spill] sm:$0xff] }
 0x7d6   : > { %v2917_v12 = vpop.eup %2916  ;;  %2936 = vpow2.f32 %v2144_v15  ;;  %v2162_v0 = vmul.f32 1.442695, %v4823_v36  ;;  %v4831_v15 = vld [vmem:[#allocation36_spill] sm:$0xff]  ;;  %v4838_v36 = vld [vmem:[#allocation10_spill] sm:$0xff] }
 0x7d7   : > { %v2919_v28 = vpop.eup %2918  ;;  %2938 = vpow2.f32 %v2146_v38  ;;  %2622 = vmatpush1.bf16.msra.mxu0 %v2621_v37  ;;  %v2633_v19 = vpack.c.bf16 %v2917_v12, %v2913_v45  ;;  %v2160_v37 = vmul.f32 1.442695, %v4821_v3  ;;  %v4832_v10 = vsub.f32 %v4831_v15, %v4092_v32 }
 0x7d8   : > { %v2921_v50 = vpop.eup %2920  ;;  %2940 = vpow2.f32 %v2148_v5  ;;  %2624 = vmatprep.subr.bf16.mxu0 %v2623_v2  ;;  %v2631_v35 = vpack.c.bf16 %v2919_v28, %v2915_v20  ;;  %v4829_v2 = vsub.f32 %v4828_v31, %v4092_v32  ;;  %v4833_v45 = vsub.f32 %v4770_v11, %v4129_v63  ;;  %v4834_v5 = vld [vmem:[#allocation38_spill] sm:$0xff] }
 0x7d9   : > { %v2923_v60 = vpop.eup %2922  ;;  %2942 = vpow2.f32 %v2150_v53  ;;  %v2172_v44 = vmul.f32 1.442695, %v4832_v10  ;;  %v4835_v27 = vsub.f32 %v4834_v5, %v4092_v32  ;;  %v4836_v20 = vsub.f32 %v4089_v4, %v4129_v63 }
 0x7da   : > { %v2925_v48 = vpop.eup %2924  ;;  %2944 = vpow2.f32 %v2152_v6  ;;  %v2174_v23 = vmul.f32 1.442695, %v4833_v45 }
 0x7db   : > { %v2927_v52 = vpop.eup %2926  ;;  %2946 = vpow2.f32 %v2154_v57  ;;  %2626 = vmatpush1.bf16.msra.mxu0 %v2625_v58  ;;  %v2637_v13 = vpack.c.bf16 %v2925_v48, %v2921_v50  ;;  %v2168_v58 = vmul.f32 1.442695, %v4829_v2  ;;  %v2178_v42 = vmul.f32 1.442695, %v4836_v20 }
 0x7dc   : > { %v2929_v41 = vpop.eup %2928  ;;  %2948 = vpow2.f32 %v2156_v49  ;;  %2628 = vmatprep.subr.bf16.mxu0 %v2627_v54  ;;  %v2635_v40 = vpack.c.bf16 %v2927_v52, %v2923_v60  ;;  %v4837_v52 = vld [vmem:[#allocation37_spill] sm:$0xff] }
 0x7dd   : > { %v2931_v16 = vpop.eup %2930  ;;  %2950 = vpow2.f32 %v2158_v56 }
 0x7de   : > { %v2933_v26 = vpop.eup %2932  ;;  %2952 = vpow2.f32 %v2160_v37  ;;  %v1352_v37 = vpop.permute.xlu1 %1351 }
 0x7df   : > { %v2935_v47 = vpop.eup %2934  ;;  %2954 = vpow2.f32 %v2162_v0  ;;  %2630 = vmatpush1.bf16.msra.mxu0 %v2629_v39  ;;  %v2641_v21 = vpack.c.bf16 %v2933_v26, %v2929_v41  ;;  %v2176_v39 = vmul.f32 1.442695, %v4835_v27  ;;  %v1471_v25 = vadd.f32 %v4837_v52, %v1352_v37  ;;  %v4839_v0 = vld [vmem:[#allocation7_spill] sm:$0xff] }
 0x7e0   : > { %v2937_v24 = vpop.eup %2936  ;;  %2956 = vpow2.f32 %v2164_v59  ;;  %2632 = vmatprep.subr.bf16.mxu0 %v2631_v35  ;;  %v2639_v17 = vpack.c.bf16 %v2935_v47, %v2931_v16  ;;  %v4840_v16 = vmov 0.0  }
 0x7e1   : > { %v2939_v38 = vpop.eup %2938  ;;  %2958 = vpow2.f32 %v2166_v33  ;;  %v2346_v33 = vsub.s32 0, %v4841_v29 }
 0x7e2   : > { %v2941_v55 = vpop.eup %2940  ;;  %2960 = vpow2.f32 %v2168_v58 }
 0x7e3   : > { %v2943_v54 = vpop.eup %2942  ;;  %2962 = vpow2.f32 %v2170_v22  ;;  %2634 = vmatpush1.bf16.msra.mxu0 %v2633_v19  ;;  %v2645_v53 = vpack.c.bf16 %v2941_v55, %v2937_v24  ;;  %v2361_v24 = vld [vmem:[%s3155_s29] sm:$0xff] }
 0x7e4   : > { %v2945_v12 = vpop.eup %2944  ;;  %2964 = vpow2.f32 %v2172_v44  ;;  %2636 = vmatprep.subr.bf16.mxu0 %v2635_v40  ;;  %v2643_v8 = vpack.c.bf16 %v2943_v54, %v2939_v38  ;;  %v1493_v40 = vld [vmem:[%s4492_s7] sm:$0xff]  ;;  %v2362_v44 = vld [vmem:[%s3155_s29 + $0x8] sm:$0xff]  ;;  %s2976_s29 = scalar_lea.vmem %s4445_s17, 256 }
 0x7e5   : > { %v2947_v11 = vpop.eup %2946  ;;  %2966 = vpow2.f32 %v2174_v23  ;;  %p2977_p11 = scmp.ne.s32.totalorder %s4445_s17, %s2976_s29  ;;  %p2984_p1 = scmp.lt.s32.totalorder %s2982_s26, %s2976_s29 }
 0x7e6   : > { %v2949_v51 = vpop.eup %2948  ;;  %2968 = vpow2.f32 %v2176_v39 }
 0x7e7   : > { %v2951_v6 = vpop.eup %2950  ;;  %2970 = vpow2.f32 %v2178_v42  ;;  %2638 = vmatpush1.bf16.msra.mxu0 %v2637_v13  ;;  %v2649_v32 = vpack.c.bf16 %v2949_v51, %v2945_v12  ;;  %v1469_v13 = vadd.f32 %v4839_v0, %v1352_v37  ;;  %p2978_p12 = pnand %p2977_p11, %p3131_p5  ;;  %p2985_p2 = por %p2984_p1, %p2983_p0 }
 0x7e8   : > { %v2953_v28 = vpop.eup %2952  ;;  %2640 = vmatprep.subr.bf16.mxu0 %v2639_v17  ;;  %v2647_v62 = vpack.c.bf16 %v2951_v6, %v2947_v11 }
 0x7e9   : > { %v2955_v57 = vpop.eup %2954  ;;  %p2979_p13 = pneg %p2978_p12 }
 0x7ea   : > { %v2957_v4 = vpop.eup %2956 }
 0x7eb   : > { %v2959_v63 = vpop.eup %2958  ;;  %2642 = vmatpush1.bf16.msra.mxu0 %v2641_v21  ;;  %v2653_v19 = vpack.c.bf16 %v2957_v4, %v2953_v28  ;;  %v2357_v21 = vpop.permute.xlu0 %2356  ;;  %p2986_p3 = pnand %p2985_p2, %p2979_p13 }
 0x7ec   : > { %v2961_v50 = vpop.eup %2960  ;;  %2644 = vmatprep.subr.bf16.mxu0 %v2643_v8  ;;  %v2651_v30 = vpack.c.bf16 %v2959_v63, %v2955_v57 }
 0x7ed   : > { %v2963_v34 = vpop.eup %2962 }
 0x7ee   : > { %v2965_v49 = vpop.eup %2964 }
 0x7ef   : > { %v2967_v35 = vpop.eup %2966  ;;  %2646 = vmatpush1.bf16.msra.mxu0 %v2645_v53  ;;  %v2657_v60 = vpack.c.bf16 %v2965_v49, %v2961_v50 }
 0x7f0   : > { %v2969_v7 = vpop.eup %2968  ;;  %2648 = vmatprep.subr.bf16.mxu0 %v2647_v62  ;;  %v2655_v56 = vpack.c.bf16 %v2967_v35, %v2963_v34 }
 0x7f1   : > { %v2971_v48 = vpop.eup %2970  ;;  %v2661_v46 = vpack.c.bf16 %v4252_v1, %v2969_v7 }
 0x7f2   : > { %v2659_v3 = vpack.c.bf16 %v4254_v43, %v2971_v48 }
 0x7f3   : > { %2650 = vmatpush1.bf16.msra.mxu0 %v2649_v32 }
 0x7f4   : > { %2652 = vmatprep.subr.bf16.mxu0 %v2651_v30 }
 0x7f7   : > { %2654 = vmatpush1.bf16.msra.mxu0 %v2653_v19 }
 0x7f8   : > { %2656 = vmatprep.subr.bf16.mxu0 %v2655_v56 }
 0x7fb   : > { %2658 = vmatpush1.bf16.msra.mxu0 %v2657_v60 }
 0x7fc   : > { %2660 = vmatprep.subr.bf16.mxu0 %v2659_v3 }
 0x7ff   : > { %2662 = vmatpush1.bf16.msra.mxu0 %v2661_v46 }
 0x802   : > { %2249 = vmatmul.mubr.f32.vlgmr.msra.gmra.mrb[74].mxu0 %v4838_v36 }
 0x803   : > { %2254 = vmatprep.mubr.f32.mxu0 %v1471_v25 }
 0x806   : > { %2255 = vmatmul.mubr.f32.gmra.mrb[76].mxu0 %v1469_v13 }
 0x8d5   : > { %v2250_v1 = vpop.f32.mrb[74].mxu0 }
 0x8d6   : > { %v2252_v41 = vpop.f32.mrb[75].mxu0 }
 0x8d9   : > { %v2256_v43 = vpop.f32.mrb[76].mxu0 }
 0x8da   : > { %v2665_v18 = vpack.c.bf16 %v2256_v43, %v2250_v1  ;;  %v2258_v9 = vpop.f32.mrb[77].mxu0  ;;  %2972 = vrcp.f32 %v2256_v43 }
 0x8db   : > { %v2663_v59 = vpack.c.bf16 %v2258_v9, %v2252_v41  ;;  %2974 = vrcp.f32 %v2258_v9 }
 0x8dd   : > { %2664 = vmatprep.subr.bf16.mxu1 %v2663_v59 }
 0x8de   : > { %2666 = vmatpush1.bf16.msra.mxu1 %v2665_v18 }
 0x8e1   : > { %2522 = vmatmul.mubr.msk.f32.vlgmr.msra.gmra.mrb[76].mxu1 %vm1564_vm1, %v1493_v40 }
 0x8e2   : > { %2339 = vmatprep.mubr.f32.mxu1 %v4840_v16 }
 0x8e4   : > { %v2973_v26 = vpop.eup %2972 }
 0x8e5   : > { %2523 = vmatmul.mubr.msk.f32.gmra.mrb[78].mxu1 %vm1564_vm1, %v1494_v61  ;;  %v2975_v31 = vpop.eup %2974  ;;  %v2347_v2 = vrot.slane %v2973_v26, %v2346_v33 }
 0x8e6   : > { %v2351_v47 = vrot.slane %v2975_v31, %v2346_v33 }
 0x9b4   : > { %v2335_v58 = vpop.f32.mrb[76].mxu1 }
 0x9b5   : > { %v2352_v14 = vmul.f32 %v2347_v2, %v2335_v58  ;;  %v2337_v22 = vpop.f32.mrb[77].mxu1 }
 0x9b6   : > { %v2353_v15 = vmul.f32 %v2351_v47, %v2337_v22 }
 0x9b7   : > { %v2359_v10 = vadd.f32 %v2357_v21, %v2352_v14 }
 0x9b8   : > { %v2360_v17 = vadd.f32 %v2357_v21, %v2353_v15  ;;  %v2341_v38 = vpop.f32.mrb[78].mxu1 }
 0x9b9   : > { %v2363_v45 = vadd.f32 %v2361_v24, %v2359_v10  ;;  %v2342_v23 = vpop.f32.mrb[79].mxu1 }
 0x9ba   : > { %v2364_v55 = vadd.f32 %v2362_v44, %v2360_v17 }
 0x9bb   : > { %2365 = vst [vmem:[%s325_s16] sm:$0xff] %v2363_v45 }
 0x9bc   : > { %2366 = vst [vmem:[%s325_s16 + $0x8] sm:$0xff] %v2364_v55 }
 0x9bd   : > { %2989 = shalt.err (!%p2986_p3)
}
 0x9be   : > { %s2990_s27 = scalar_lea.hbm %s4443_s23, 256  ;;  %s2994_s16 = scalar_lea.hbm %s4494_s9, 512 }
 0x9bf   : > { %p2991_p4 = scmp.ne.s32.totalorder %s4443_s23, %s2990_s27  ;;  %p2995_p9 = scmp.lt.u32.totalorder %s4443_s23, %s4494_s9 }
 0x9c0   : > { %p2996_p10 = scmp.lt.u32.totalorder %s2994_s16, %s2990_s27  ;;  %p2998_p12 = scmp.lt.u32.totalorder %s2990_s27, %s4443_s23 }
 0x9c1   : > { %p2992_p7 = pnand %p2991_p4, %p3131_p5 }
 0x9c2   : > { %p2997_p11 = por %p2996_p10, %p2995_p9 }
 0x9c3   : > { %p2993_p8 = pneg %p2992_p7 }
 0x9c4   : > { %p2999_p13 = por %p2998_p12, %p2997_p11 }
 0x9c6   : > { %p3000_p0 = pnand %p2999_p13, %p2993_p8 }
 0x9c8   : > { %3003 = shalt.err (!%p3000_p0)
}
 0x9c9   : > { %2669 = dma.vmem_to_hbm [thread:$0]  (%p3131_p5), %s4445_s17, 256, %s4443_s23, %s2368_s13  }
 0x9ca PF: > { %p2675_p1 = scmp.ge.s32.totalorder %s3038_s12, 2  ;;  %s2394_s29 = sand.u32 1, %s3026_s30  }
 0x9cb   : > { %s2395_s24 = scalar_lea.sflag [#allocation5], %s2394_s29 }
 0x9cc   : > { %p2672_p2 = pnand %p2675_p1, %p3135_p6 }
 0x9ce   : > { %3021 = dma.done.wait (!%p2672_p2), %s2395_s24, 256  }
 0x9cf   : > { %3023 = vsyncadd (!%p2672_p2), %s2395_s24, 4294967040  ;;  %p19_p3 = scmp.ge.s32.totalorder %s3118_s15, 4   ;;  %s4842_s30 = smov %s3030_s10 }
 0x9d0   : > { %s4843_s10 = smov %s3034_s11  ;;  %s4844_s11 = smov %s3129_s18 }
 0x9d1   : > { %s4845_s12 = smov %s3118_s15  ;;  %21 = sbr.rel (!%p19_p3) target bundleno = 3 (0x3), region = 91 }
 0x9d8   :  { %2400 = vsyncpa [#allocation5], 1 }
 0x9d9   :  { %2402 = vsyncpa [#allocation5 + $0x1], 1 }

</bundles_post_ra>
